<compile_context>
chip_gen: v6e
topology: v6e:2x2x1
jax: 0.10.0
libtpu: 0.0.40
codegen_flags: <defaults>
</compile_context>

<pallas_src>
import functools

import jax
import jax.numpy as jnp
from jax.experimental import pallas as pl
from jax.experimental.pallas import tpu as pltpu

_SUBLANE = 8


def _tpu_vmem_bytes():
    try:
        return int(pltpu.get_tpu_info().vmem_capacity_bytes)
    except Exception:  # interpret mode / no hardware info available
        return 64 * 1024 * 1024


def _choose_tiling(nrows, hw, pbins, itemsize):
    """Pick (row-tile, scoped-vmem-request), generation aware."""
    phys = _tpu_vmem_bytes()
    # Raise the scoped-VMEM request above the 16/32 MiB defaults, but stay
    # generation-aware: ~80 MiB on 128-MiB chips (v5e/v6e), ~40 MiB on 64-MiB
    # v7x, always leaving headroom for compiler scratch.
    scoped = max(32 << 20, min(phys * 5 // 8, 80 << 20))
    # Per-row VMEM cost: double-buffered input rows + ~3 f32 row-sized
    # temporaries (clamp / log / x^p) + double-buffered f32 output rows.
    bytes_per_row = hw * (2 * max(int(itemsize), 2) + 3 * 4) + 2 * 4 * pbins
    cap = max(_SUBLANE, (scoped // 2) // max(bytes_per_row, 1))
    if nrows % _SUBLANE != 0:
        return nrows, scoped  # full-extent block (always legal)
    tr = _SUBLANE
    # Grow while it divides nrows, fits the budget, and keeps >= 2 grid steps
    # so the 'parallel' grid axis has work for both v7x TensorCores.
    while nrows % (tr * 2) == 0 and tr * 2 <= cap and nrows // (tr * 2) >= 2:
        tr *= 2
    return tr, scoped


def _segments(hw, bin_num):
    """0/1 segment matrix (hw, P) covering every pyramid level, plus 1/m per column."""
    cols, inv_m = [], []
    for b in bin_num:
        if hw % b != 0:
            raise ValueError(f"h*w={hw} not divisible by bin count {b}")
        m = hw // b
        col = (jnp.arange(hw, dtype=jnp.int32)[:, None] // m
               == jnp.arange(b, dtype=jnp.int32)[None, :])
        cols.append(col.astype(jnp.float32))
        inv_m.append(jnp.full((b,), 1.0 / m, dtype=jnp.float32))
    seg = jnp.concatenate(cols, axis=1)          # (hw, P), exactly 0/1
    inv_m = jnp.concatenate(inv_m)[None, :]      # (1, P)
    return seg, inv_m


def _gemhpp_kernel(p_ref, seg_ref, invm_ref, x_ref, o_ref, *, eps):
    """One row-tile of GeMHPP, all pyramid levels at once.

    p_ref    : SMEM (1,)        -- learnable power p
    seg_ref  : VMEM (hw, P)     -- 0/1 bin-membership matrix (resident)
    invm_ref : VMEM (1, P)      -- 1/m for each output column
    x_ref    : VMEM (tr, hw)    -- rows = (n*c) slice, lanes = spatial positions
    o_ref    : VMEM (tr, P)     -- GeM output for every bin of every level
    """
    p = p_ref[0]
    inv_p = 1.0 / p                               # scalar, once per block
    # clamp(x, eps)^p on a fully dense (rows, hw) tile: 2 EUP ops / element.
    # TODO(synk): static-p fast path (p=6.5 -> x^6*sqrt(x), ~1 EUP/elem) and
    # bf16 EUP transcendentals on v6e/v7x would roughly halve the EUP load.
    x = jnp.maximum(x_ref[...].astype(jnp.float32), eps)
    xp = jnp.exp(p * jnp.log(x))
    # Per-bin sums for every pyramid level in one MXU matmul (seg is 0/1,
    # HIGHEST keeps the f32 operands from being rounded to a single bf16 pass).
    s = jnp.dot(xp, seg_ref[...],
                preferred_element_type=jnp.float32,
                precision=jax.lax.Precision.HIGHEST)        # (tr, P)
    mean = s * invm_ref[...]                                 # avg_pool over each bin
    o_ref[...] = jnp.exp(jnp.log(mean) * inv_p).astype(o_ref.dtype)


def gemhpp_forward(x, p, bin_num=(64,), eps=1e-6):
    """GeMHPP forward.  x: [n, c, h, w] -> [n, c, sum(bin_num)]."""
    n, c, h, w = x.shape
    hw = h * w
    bin_num = tuple(int(b) for b in bin_num)
    pbins = sum(bin_num)

    seg, inv_m = _segments(hw, bin_num)
    xr = x.reshape(n * c, hw)                     # contiguous reshape: free, no HBM copy
    p_arr = jnp.asarray(p, jnp.float32).reshape(1)

    nrows = n * c
    tr, scoped = _choose_tiling(nrows, hw, pbins, jnp.dtype(x.dtype).itemsize)
    kernel = functools.partial(_gemhpp_kernel, eps=float(eps))

    out = pl.pallas_call(
        kernel,
        out_shape=jax.ShapeDtypeStruct((nrows, pbins), x.dtype),
        grid=(nrows // tr,),
        in_specs=[
            pl.BlockSpec(memory_space=pltpu.SMEM),        # p (learnable scalar)
            pl.BlockSpec((hw, pbins), lambda i: (0, 0)),  # segment matrix (resident)
            pl.BlockSpec((1, pbins), lambda i: (0, 0)),   # 1/m per column (resident)
            pl.BlockSpec((tr, hw), lambda i: (i, 0)),     # x row tile
        ],
        out_specs=pl.BlockSpec((tr, pbins), lambda i: (i, 0)),
        compiler_params=pltpu.CompilerParams(
            dimension_semantics=("parallel",),
            vmem_limit_bytes=int(scoped)),
    )(p_arr, seg, inv_m, xr)

    return out.reshape(n, c, pbins)               # free reshape back to [n, c, P]


def _reference(x, p, bin_num=(64,), eps=1e-6):
    """Pure-jnp reference replicating the PyTorch semantics."""
    n, c = x.shape[:2]
    feats = []
    for b in bin_num:
        z = x.reshape(n, c, b, -1)
        z = jnp.maximum(z, eps) ** p
        z = jnp.mean(z, axis=-1) ** (1.0 / p)
        feats.append(z)
    return jnp.concatenate(feats, axis=-1)


if __name__ == "__main__":
    key = jax.random.PRNGKey(0)
    p_param = jnp.ones((1,), dtype=jnp.float32) * 6.5   # nn.Parameter(ones(1)*6.5)
    eps = 1e-6

    # [n, c, h, w]: c=128 like GaitGL; h*w = 256 spatial positions (lane-dense).
    x = jax.random.uniform(key, (2, 128, 16, 16), dtype=jnp.float32)

    # Single level (module default bin_num=[64]).
    fwd1 = jax.jit(functools.partial(gemhpp_forward, bin_num=(64,), eps=eps))
    out1 = jax.block_until_ready(fwd1(x, p_param))
    ref1 = _reference(x, p_param[0], bin_num=(64,), eps=eps)
    assert out1.shape == (2, 128, 64), out1.shape
    assert jnp.allclose(out1, ref1, rtol=1e-3, atol=1e-6), float(
        jnp.max(jnp.abs(out1 - ref1)))

    # Multi-level pyramid: still a single Pallas pass over x, fused output.
    bins = (64, 16, 4)
    fwd2 = jax.jit(functools.partial(gemhpp_forward, bin_num=bins, eps=eps))
    out2 = jax.block_until_ready(fwd2(x, p_param))
    ref2 = _reference(x, p_param[0], bin_num=bins, eps=eps)
    assert out2.shape == (2, 128, sum(bins)), out2.shape
    assert jnp.allclose(out2, ref2, rtol=1e-3, atol=1e-6), float(
        jnp.max(jnp.abs(out2 - ref2)))

    print("KERNEL_OK")
</pallas_src>

<mosaic_0001>
module attributes {stable_mosaic.version = 11 : i64} {
  func.func @_gemhpp_kernel(%arg0: i32, %arg1: memref<1xf32, #tpu.memory_space<smem>>, %arg2: memref<256x64xf32, #tpu.memory_space<vmem>>, %arg3: memref<1x64xf32, #tpu.memory_space<vmem>>, %arg4: memref<128x256xf32, #tpu.memory_space<vmem>>, %arg5: memref<128x64xf32, #tpu.memory_space<vmem>>) attributes {dimension_semantics = [#tpu.dimension_semantics<parallel>], iteration_bounds = array<i64: 2>, scalar_prefetch = 0 : i64, scratch_operands = 0 : i64, tpu.core_type = #tpu.core_type<tc>, window_params = [{transform_indices = @transform_0, window_bounds = array<i64: 1>}, {pipeline_mode = #tpu.pipeline_mode<synchronous>, transform_indices = @transform_1, window_bounds = array<i64: 256, 64>}, {pipeline_mode = #tpu.pipeline_mode<synchronous>, transform_indices = @transform_2, window_bounds = array<i64: 1, 64>}, {transform_indices = @transform_3, window_bounds = array<i64: 128, 256>}, {transform_indices = @transform_4, window_bounds = array<i64: 128, 64>}]} {
    %c0 = arith.constant 0 : index
    %0 = memref.load %arg1[%c0] : memref<1xf32, #tpu.memory_space<smem>>
    %cst = arith.constant 1.000000e+00 : f32
    %1 = arith.divf %cst, %0 : f32
    %c0_0 = arith.constant 0 : index
    %c0_1 = arith.constant 0 : index
    %2 = vector.load %arg4[%c0_0, %c0_1] : memref<128x256xf32, #tpu.memory_space<vmem>>, vector<128x256xf32>
    %cst_2 = arith.constant 9.99999997E-7 : f32
    %3 = vector.broadcast %cst_2 : f32 to vector<128x256xf32>
    %4 = arith.maximumf %2, %3 : vector<128x256xf32>
    %5 = math.log %4 : vector<128x256xf32>
    %6 = vector.broadcast %0 : f32 to vector<128x256xf32>
    %7 = arith.mulf %6, %5 : vector<128x256xf32>
    %8 = math.exp %7 : vector<128x256xf32>
    %c0_3 = arith.constant 0 : index
    %c0_4 = arith.constant 0 : index
    %9 = vector.load %arg2[%c0_3, %c0_4] : memref<256x64xf32, #tpu.memory_space<vmem>>, vector<256x64xf32>
    %cst_5 = arith.constant dense<0.000000e+00> : vector<128x64xf32>
    %10 = tpu.matmul %8, %9, %cst_5 {dimension_numbers = #tpu.dot_dimension_numbers<[1], [0], [0], [1], [0, 0, 1, 1], [], []>, precision = #tpu.contract_precision<fp32>} : vector<128x256xf32>, vector<256x64xf32>, vector<128x64xf32> -> vector<128x64xf32>
    %c0_6 = arith.constant 0 : index
    %c0_7 = arith.constant 0 : index
    %11 = vector.load %arg3[%c0_6, %c0_7] : memref<1x64xf32, #tpu.memory_space<vmem>>, vector<1x64xf32>
    %12 = vector.broadcast %11 : vector<1x64xf32> to vector<128x64xf32>
    %13 = arith.mulf %10, %12 : vector<128x64xf32>
    %14 = math.log %13 : vector<128x64xf32>
    %15 = vector.broadcast %1 : f32 to vector<128x64xf32>
    %16 = arith.mulf %14, %15 : vector<128x64xf32>
    %17 = math.exp %16 : vector<128x64xf32>
    %c0_8 = arith.constant 0 : index
    %c0_9 = arith.constant 0 : index
    %18 = vector.load %arg5[%c0_8, %c0_9] : memref<128x64xf32, #tpu.memory_space<vmem>>, vector<128x64xf32>
    tpu.vector_store %arg5[%c0_8, %c0_9], %17 {strides = array<i32>} : memref<128x64xf32, #tpu.memory_space<vmem>>, vector<128x64xf32>,
    return
  }
  func.func @transform_0(%arg0: i32) -> i32 {
    %c0_i32 = arith.constant 0 : i32
    %c0_i32_0 = arith.constant 0 : i32
    return %c0_i32 : i32
  }
  func.func @transform_1(%arg0: i32) -> (i32, i32) {
    %c0_i32 = arith.constant 0 : i32
    %c0_i32_0 = arith.constant 0 : i32
    %c0_i32_1 = arith.constant 0 : i32
    return %c0_i32, %c0_i32_0 : i32, i32
  }
  func.func @transform_2(%arg0: i32) -> (i32, i32) {
    %c0_i32 = arith.constant 0 : i32
    %c0_i32_0 = arith.constant 0 : i32
    %c0_i32_1 = arith.constant 0 : i32
    return %c0_i32, %c0_i32_0 : i32, i32
  }
  func.func @transform_3(%arg0: i32) -> (i32, i32) {
    %c0_i32 = arith.constant 0 : i32
    %c0_i32_0 = arith.constant 0 : i32
    return %arg0, %c0_i32 : i32, i32
  }
  func.func @transform_4(%arg0: i32) -> (i32, i32) {
    %c0_i32 = arith.constant 0 : i32
    %c0_i32_0 = arith.constant 0 : i32
    return %arg0, %c0_i32 : i32, i32
  }
}

</mosaic_0001>

<bundles_post_ra>
// kernel: gemhpp_forward.1
= control target key start
LH: loop header
LB: loop body
LE: loop exit
PB: predicated region body
PF: predicated region fallthrough
CT: control target
= control target key end

     0   :  { %s3079_s17 = smov 0   ;;  %s4557_s0 = inlined_call_operand.<no memory space> [shape: f32[1], index: 0, kind: input, shape index: {}]   ;;  %s4558_s1 = inlined_call_operand.vmem [shape: f32[256,64], index: 1, kind: input, shape index: {}]   ;;  %s4559_s2 = inlined_call_operand.vmem [shape: f32[1,64], index: 2, kind: input, shape index: {}]   ;;  %s4560_s3 = inlined_call_operand.vmem [shape: f32[256,256], index: 3, kind: input, shape index: {}]   ;;  %s4561_s4 = inlined_call_operand.vmem [shape: f32[256,64], index: 4, kind: output, shape index: {}]  }
   0x1   :  { %9 = sst [smem:[#allocation2]] %s4557_s0 }
   0x2 LB: > { %s2345_s18 = sadd.s32 4294967295, %s3049_s17   ;;  %p2349_p0 = scmp.ge.s32.totalorder %s3049_s17, 1  ;;  %s3049_s17 = sphi %s3079_s17, %s15_s17  }
   0x3   : > { %p165_p1 = scmp.lt.s32.totalorder %s3049_s17, 3 }
   0x5   : > { %p166_p2 = pnand %p2349_p0, %p165_p1 }
   0x7   : > { %169 = sbr.rel (%p166_p2) target bundleno = 542 (0x21e), region = 36 }
   0xc   : > { %v465_v0 = vld [vmem:[%s4558_s1 + $0xf8] sm:$0xff]  ;;  %v464_v2 = vld [vmem:[%s4558_s1 + $0xf0] sm:$0xff]  ;;  %v463_v7 = vld [vmem:[%s4558_s1 + $0xe8] sm:$0xff]  ;;  %s3297_s5 = sshll.u32 %s2345_s18, 4  ;;  %s205_s10 = sld [smem:[#allocation2]]  ;;  %vm2272_vm0 = vcmask 523264  }
   0xd   : > { %v449_v1 = vld [vmem:[%s4558_s1 + $0x78] sm:$0xff]  ;;  %v3096_v3 = vand.u32 4294901760, %v465_v0  ;;  %v3100_v5 = vand.u32 4294901760, %v464_v2  ;;  %v448_v6 = vld [vmem:[%s4558_s1 + $0x70] sm:$0xff]  ;;  %v447_v8 = vld [vmem:[%s4558_s1 + $0x68] sm:$0xff]  ;;  %v3113_v10 = vand.u32 4294901760, %v463_v7 }
   0xe   : > { %v3098_v4 = vand.u32 4294901760, %v449_v1  ;;  %v3111_v9 = vand.u32 4294901760, %v448_v6  ;;  %v3115_v11 = vand.u32 4294901760, %v447_v8  ;;  %v462_v12 = vld [vmem:[%s4558_s1 + $0xe0] sm:$0xff]  ;;  %v461_v18 = vld [vmem:[%s4558_s1 + $0xd8] sm:$0xff]  ;;  %v460_v40 = vld [vmem:[%s4558_s1 + $0xd0] sm:$0xff] }
   0xf   : > { %4744 = vst [vmem:[#allocation3_spill] sm:$0xff] %v3096_v3  ;;  %4745 = vst [vmem:[#allocation4_spill] sm:$0xff] %v3100_v5  ;;  %v446_v13 = vld [vmem:[%s4558_s1 + $0x60] sm:$0xff]  ;;  %2359 = vmatprep.subr.mxu0 %v3096_v3  ;;  %v3125_v14 = vsub.f32 %v465_v0, %v3096_v3  ;;  %v3131_v16 = vsub.f32 %v464_v2, %v3100_v5  ;;  %v3133_v17 = vand.u32 4294901760, %v462_v12  ;;  %v3161_v30 = vand.u32 4294901760, %v461_v18  ;;  %v445_v39 = vld [vmem:[%s4558_s1 + $0x58] sm:$0xff] }
  0x10   : > { %4746 = vst [vmem:[#allocation5_spill] sm:$0xff] %v3111_v9  ;;  %4747 = vst [vmem:[#allocation6_spill] sm:$0xff] %v3113_v10  ;;  %v3128_v15 = vsub.f32 %v449_v1, %v3098_v4  ;;  %2360 = vmatpush3.msra.mxu0 %v3098_v4  ;;  %v3140_v19 = vsub.f32 %v448_v6, %v3111_v9  ;;  %v3143_v20 = vsub.f32 %v463_v7, %v3113_v10  ;;  %v444_v45 = vld [vmem:[%s4558_s1 + $0x50] sm:$0xff]  ;;  %v459_v46 = vld [vmem:[%s4558_s1 + $0xc8] sm:$0xff]  ;;  %p193_p3 = scmp.lt.s32.totalorder %s3297_s5, 31 }
  0x11   : > { %4748 = vst [vmem:[#allocation7_spill] sm:$0xff] %v3115_v11  ;;  %4749 = vst [vmem:[#allocation8_spill] sm:$0xff] %v3125_v14  ;;  %v3146_v21 = vsub.f32 %v447_v8, %v3115_v11  ;;  %v3148_v22 = vand.u32 4294901760, %v446_v13  ;;  %v4583_v23 = vand.u32 4294901760, %v3125_v14  ;;  %2361 = vmatprep.subr.mxu0 %v3100_v5  ;;  %v4577_v25 = vand.u32 4294901760, %v3131_v16  ;;  %v443_v47 = vld [vmem:[%s4558_s1 + $0x48] sm:$0xff] }
  0x12   : > { %4750 = vst [vmem:[#allocation9_spill] sm:$0xff] %v3128_v15  ;;  %4751 = vst [vmem:[#allocation10_spill] sm:$0xff] %v3131_v16  ;;  %v4581_v24 = vand.u32 4294901760, %v3128_v15  ;;  %v3155_v26 = vsub.f32 %v462_v12, %v3133_v17  ;;  %2362 = vmatpush3.msra.mxu0 %v3111_v9  ;;  %v4576_v27 = vand.u32 4294901760, %v3140_v19  ;;  %v4575_v28 = vand.u32 4294901760, %v3143_v20  ;;  %v458_v52 = vld [vmem:[%s4558_s1 + $0xc0] sm:$0xff] }
  0x13   : > { %4752 = vst [vmem:[#allocation11_spill] sm:$0xff] %v3133_v17  ;;  %4753 = vst [vmem:[#allocation12_spill] sm:$0xff] %v3140_v19  ;;  %v4574_v29 = vand.u32 4294901760, %v3146_v21  ;;  %v919_v31 = vsub.f32 %v3125_v14, %v4583_v23  ;;  %v926_v33 = vsub.f32 %v3131_v16, %v4577_v25  ;;  %2363 = vmatprep.subr.mxu0 %v3113_v10  ;;  %v3212_v54 = vand.u32 4294901760, %v445_v39  ;;  %v442_v61 = vld [vmem:[%s4558_s1 + $0x40] sm:$0xff]  ;;  %v457_v12 = vld [vmem:[%s4558_s1 + $0xb8] sm:$0xff] }
  0x14   : > { %4754 = vst [vmem:[#allocation13_spill] sm:$0xff] %v3143_v20  ;;  %4755 = vst [vmem:[#allocation14_spill] sm:$0xff] %v3146_v21  ;;  %v807_v32 = vsub.f32 %v3128_v15, %v4581_v24  ;;  %v4571_v34 = vand.u32 4294901760, %v3155_v26  ;;  %v814_v35 = vsub.f32 %v3140_v19, %v4576_v27  ;;  %2364 = vmatpush3.msra.mxu0 %v3115_v11  ;;  %v3217_v56 = vand.u32 4294901760, %v460_v40  ;;  %s5069_s5 = smov (!%p193_p3, %s3297_s5), 31  ;;  %v451_v23 = vld [vmem:[%s4558_s1 + $0x88] sm:$0xff] }
  0x15   : > { %4756 = vst [vmem:[#allocation15_spill] sm:$0xff] %v3148_v22  ;;  %4757 = vst [vmem:[#allocation16_spill] sm:$0xff] %v3155_v26  ;;  %v933_v36 = vsub.f32 %v3143_v20, %v4575_v28  ;;  %v821_v37 = vsub.f32 %v3146_v21, %v4574_v29  ;;  %v3185_v38 = vsub.f32 %v446_v13, %v3148_v22  ;;  %v920_v41 = vand.u32 4294901760, %v919_v31  ;;  %s2358_s28 = sshll.u32 %s5069_s5, 4  ;;  %s2354_s14 = sshll.u32 %s5069_s5, 3 }
  0x16   : > { %4758 = vst [vmem:[#allocation17_spill] sm:$0xff] %v3161_v30  ;;  %v808_v42 = vand.u32 4294901760, %v807_v32  ;;  %v927_v43 = vand.u32 4294901760, %v926_v33  ;;  %2365 = vmatprep.subr.mxu0 %v3133_v17  ;;  %v940_v44 = vsub.f32 %v3155_v26, %v4571_v34  ;;  %v815_v48 = vand.u32 4294901760, %v814_v35  ;;  %s3452_s8 = scalar_lea.vmem %s4560_s3, %s2358_s28  ;;  %s4481_s16 = scalar_lea.vmem %s4561_s4, %s2354_s14 }
  0x17   : > { %4759 = vst [vmem:[#allocation18_spill] sm:$0xff] %v3185_v38  ;;  %v934_v49 = vand.u32 4294901760, %v933_v36  ;;  %v822_v50 = vand.u32 4294901760, %v821_v37  ;;  %2366 = vmatpush3.msra.mxu0 %v3148_v22  ;;  %v4570_v51 = vand.u32 4294901760, %v3185_v38  ;;  %2439 = vmatprep.subr.mxu1 %v920_v41  ;;  %v3215_v55 = vsub.f32 %v461_v18, %v3161_v30 }
  0x18   : > { %v941_v53 = vand.u32 4294901760, %v940_v44  ;;  %2367 = vmatprep.subr.mxu0 %v3161_v30  ;;  %2440 = vmatpush3.msra.mxu1 %v808_v42  ;;  %v3222_v58 = vand.u32 4294901760, %v444_v45  ;;  %v3224_v59 = vand.u32 4294901760, %v459_v46  ;;  %v3226_v60 = vand.u32 4294901760, %v443_v47 }
  0x19   : > { %4760 = vst [vmem:[#allocation19_spill] sm:$0xff] %v3215_v55  ;;  %v828_v57 = vsub.f32 %v3185_v38, %v4570_v51  ;;  %2441 = vmatprep.subr.mxu1 %v927_v43  ;;  %2368 = vmatpush3.msra.mxu0 %v3212_v54  ;;  %v4569_v62 = vand.u32 4294901760, %v3215_v55  ;;  %v3234_v63 = vsub.f32 %v445_v39, %v3212_v54  ;;  %v3239_v1 = vand.u32 4294901760, %v458_v52  ;;  %v441_v39 = vld [vmem:[%s4558_s1 + $0x38] sm:$0xff] }
  0x1a   : > { %v3237_v0 = vsub.f32 %v460_v40, %v3217_v56  ;;  %2442 = vmatpush3.msra.mxu1 %v815_v48  ;;  %2369 = vmatprep.subr.mxu0 %v3217_v56  ;;  %v3243_v6 = vsub.f32 %v444_v45, %v3222_v58  ;;  %v3246_v7 = vsub.f32 %v459_v46, %v3224_v59  ;;  %v3260_v32 = vand.u32 4294901760, %v442_v61  ;;  %v456_v48 = vld [vmem:[%s4558_s1 + $0xb0] sm:$0xff] }
  0x1b   : > { %4761 = vst [vmem:[#allocation20_spill] sm:$0xff] %v3234_v63  ;;  %v829_v2 = vand.u32 4294901760, %v828_v57  ;;  %v3249_v8 = vsub.f32 %v443_v47, %v3226_v60  ;;  %2443 = vmatprep.subr.mxu1 %v934_v49  ;;  %v947_v13 = vsub.f32 %v3215_v55, %v4569_v62  ;;  %v4567_v18 = vand.u32 4294901760, %v3234_v63  ;;  %2370 = vmatpush3.msra.mxu0 %v3222_v58  ;;  %v440_v57 = vld [vmem:[%s4558_s1 + $0x30] sm:$0xff] }
  0x1c   : > { %4762 = vst [vmem:[#allocation21_spill] sm:$0xff] %v3237_v0  ;;  %v4566_v31 = vand.u32 4294901760, %v3237_v0  ;;  %2444 = vmatpush3.msra.mxu1 %v822_v50  ;;  %2371 = vmatprep.subr.mxu0 %v3224_v59  ;;  %v4564_v33 = vand.u32 4294901760, %v3243_v6  ;;  %v4563_v35 = vand.u32 4294901760, %v3246_v7  ;;  %v3267_v37 = vsub.f32 %v458_v52, %v3239_v1 }
  0x1d   : > { %v4562_v36 = vand.u32 4294901760, %v3249_v8  ;;  %2445 = vmatprep.subr.mxu1 %v941_v53  ;;  %v948_v40 = vand.u32 4294901760, %v947_v13  ;;  %v835_v41 = vsub.f32 %v3234_v63, %v4567_v18  ;;  %2372 = vmatpush3.msra.mxu0 %v3226_v60  ;;  %v3279_v43 = vand.u32 4294901760, %v457_v12  ;;  %v439_v13 = vld [vmem:[%s4558_s1 + $0x28] sm:$0xff] }
  0x1e   : > { %v954_v42 = vsub.f32 %v3237_v0, %v4566_v31  ;;  %2446 = vmatpush3.msra.mxu1 %v829_v2  ;;  %v842_v44 = vsub.f32 %v3243_v6, %v4564_v33  ;;  %v961_v45 = vsub.f32 %v3246_v7, %v4563_v35  ;;  %2373 = vmatprep.subr.mxu0 %v3239_v1  ;;  %v4565_v47 = vand.u32 4294901760, %v3267_v37  ;;  %v455_v2 = vld [vmem:[%s4558_s1 + $0xa8] sm:$0xff] }
  0x1f   : > { %v849_v46 = vsub.f32 %v3249_v8, %v4562_v36  ;;  %2447 = vmatprep.subr.mxu1 %v948_v40  ;;  %v836_v49 = vand.u32 4294901760, %v835_v41  ;;  %2374 = vmatpush3.msra.mxu0 %v3260_v32  ;;  %v3301_v52 = vsub.f32 %v442_v61, %v3260_v32  ;;  %v3303_v53 = vand.u32 4294901760, %v441_v39 }
  0x20   : > { %v955_v50 = vand.u32 4294901760, %v954_v42  ;;  %v843_v40 = vand.u32 4294901760, %v842_v44  ;;  %v962_v41 = vand.u32 4294901760, %v961_v45  ;;  %v968_v61 = vsub.f32 %v3267_v37, %v4565_v47  ;;  %2375 = vmatprep.subr.mxu0 %v3279_v43  ;;  %v454_v45 = vld [vmem:[%s4558_s1 + $0xa0] sm:$0xff] }
  0x21   : > { %v850_v42 = vand.u32 4294901760, %v849_v46  ;;  %2448 = vmatpush3.msra.mxu1 %v836_v49  ;;  %v4568_v36 = vand.u32 4294901760, %v3301_v52  ;;  %2376 = vmatpush3.msra.mxu0 %v3303_v53  ;;  %v3321_v35 = vsub.f32 %v457_v12, %v3279_v43  ;;  %v3323_v33 = vand.u32 4294901760, %v456_v48 }
  0x22   : > { %v3326_v44 = vsub.f32 %v441_v39, %v3303_v53  ;;  %2449 = vmatprep.subr.mxu1 %v955_v50  ;;  %v969_v46 = vand.u32 4294901760, %v968_v61  ;;  %v3332_v49 = vand.u32 4294901760, %v440_v57  ;;  %v3334_v47 = vand.u32 4294901760, %v455_v2  ;;  %v438_v61 = vld [vmem:[%s4558_s1 + $0x20] sm:$0xff] }
  0x23   : > { %v3336_v31 = vand.u32 4294901760, %v439_v13  ;;  %2450 = vmatpush3.msra.mxu1 %v843_v40  ;;  %v856_v12 = vsub.f32 %v3301_v52, %v4568_v36  ;;  %v4573_v39 = vand.u32 4294901760, %v3321_v35  ;;  %2377 = vmatprep.subr.mxu0 %v3323_v33  ;;  %v3345_v50 = vsub.f32 %v456_v48, %v3323_v33 }
  0x24   : > { %4763 = vst [vmem:[#allocation22_spill] sm:$0xff] %v3334_v47  ;;  %v4572_v18 = vand.u32 4294901760, %v3326_v44  ;;  %2451 = vmatprep.subr.mxu1 %v962_v41  ;;  %2378 = vmatpush3.msra.mxu0 %v3332_v49  ;;  %v3352_v40 = vsub.f32 %v440_v57, %v3332_v49  ;;  %v3355_v36 = vsub.f32 %v455_v2, %v3334_v47  ;;  %v3357_v62 = vand.u32 4294901760, %v454_v45  ;;  %v453_v2 = vld [vmem:[%s4558_s1 + $0x98] sm:$0xff] }
  0x25   : > { %4764 = vst [vmem:[#allocation23_spill] sm:$0xff] %v3336_v31  ;;  %v3360_v51 = vsub.f32 %v439_v13, %v3336_v31  ;;  %2452 = vmatpush3.msra.mxu1 %v850_v42  ;;  %v857_v48 = vand.u32 4294901760, %v856_v12  ;;  %v975_v34 = vsub.f32 %v3321_v35, %v4573_v39  ;;  %v4579_v57 = vand.u32 4294901760, %v3345_v50  ;;  %2379 = vmatprep.subr.mxu0 %v3334_v47  ;;  %v437_v39 = vld [vmem:[%s4558_s1 + $0x18] sm:$0xff] }
  0x26   : > { %4765 = vst [vmem:[#allocation24_spill] sm:$0xff] %v3357_v62  ;;  %v863_v41 = vsub.f32 %v3326_v44, %v4572_v18  ;;  %2453 = vmatprep.subr.mxu1 %v969_v46  ;;  %v4578_v13 = vand.u32 4294901760, %v3352_v40  ;;  %2380 = vmatpush3.msra.mxu0 %v3336_v31  ;;  %v4580_v42 = vand.u32 4294901760, %v3355_v36  ;;  %v3382_v18 = vand.u32 4294901760, %v438_v61 }
  0x27   : > { %4766 = vst [vmem:[#allocation25_spill] sm:$0xff] %v3360_v51  ;;  %v4582_v12 = vand.u32 4294901760, %v3360_v51  ;;  %2454 = vmatpush3.msra.mxu1 %v857_v48  ;;  %v976_v29 = vand.u32 4294901760, %v975_v34  ;;  %v982_v46 = vsub.f32 %v3345_v50, %v4579_v57  ;;  %2381 = vmatprep.subr.mxu0 %v3357_v62  ;;  %v3392_v27 = vsub.f32 %v454_v45, %v3357_v62  ;;  %v452_v45 = vld [vmem:[%s4558_s1 + $0x90] sm:$0xff]  ;;  %v435_v62 = vld [vmem:[%s4558_s1 + $0x8] sm:$0xff] }
  0x28   : > { %4767 = vst [vmem:[#allocation26_spill] sm:$0xff] %v3382_v18  ;;  %v864_v28 = vand.u32 4294901760, %v863_v41  ;;  %v870_v25 = vsub.f32 %v3352_v40, %v4578_v13  ;;  %v989_v48 = vsub.f32 %v3355_v36, %v4580_v42  ;;  %2382 = vmatpush3.msra.mxu0 %v3382_v18  ;;  %v3404_v41 = vand.u32 4294901760, %v453_v2  ;;  %v436_v13 = vld [vmem:[%s4558_s1 + $0x10] sm:$0xff] }
  0x29   : > { %4768 = vst [vmem:[#allocation27_spill] sm:$0xff] %v3392_v27  ;;  %v877_v34 = vsub.f32 %v3360_v51, %v4582_v12  ;;  %2455 = vmatprep.subr.mxu1 %v976_v29  ;;  %v983_v57 = vand.u32 4294901760, %v982_v46  ;;  %v4594_v42 = vand.u32 4294901760, %v3392_v27  ;;  %v3414_v24 = vsub.f32 %v438_v61, %v3382_v18 }
  0x2a   : > { %4769 = vst [vmem:[#allocation28_spill] sm:$0xff] %v3404_v41  ;;  %v3416_v12 = vand.u32 4294901760, %v437_v39  ;;  %2456 = vmatpush3.msra.mxu1 %v864_v28  ;;  %v871_v31 = vand.u32 4294901760, %v870_v25  ;;  %v990_v29 = vand.u32 4294901760, %v989_v48  ;;  %2383 = vmatprep.subr.mxu0 %v3404_v41  ;;  %v3427_v61 = vsub.f32 %v453_v2, %v3404_v41  ;;  %v450_v28 = vld [vmem:[%s4558_s1 + $0x80] sm:$0xff] }
  0x2b   : > { %4770 = vst [vmem:[#allocation29_spill] sm:$0xff] %v3414_v24  ;;  %v878_v46 = vand.u32 4294901760, %v877_v34  ;;  %2457 = vmatprep.subr.mxu1 %v983_v57  ;;  %v996_v18 = vsub.f32 %v3392_v27, %v4594_v42  ;;  %v4597_v47 = vand.u32 4294901760, %v3414_v24  ;;  %v3434_v51 = vand.u32 4294901760, %v452_v45 }
  0x2c   : > { %4771 = vst [vmem:[#allocation30_spill] sm:$0xff] %v3416_v12  ;;  %4772 = vst [vmem:[#allocation31_spill] sm:$0xff] %v3427_v61  ;;  %2384 = vmatpush3.msra.mxu0 %v3416_v12  ;;  %v3437_v25 = vsub.f32 %v437_v39, %v3416_v12  ;;  %2458 = vmatpush3.msra.mxu1 %v871_v31  ;;  %v3443_v2 = vand.u32 4294901760, %v436_v13  ;;  %v3445_v48 = vand.u32 4294901760, %v451_v23  ;;  %v3447_v34 = vand.u32 4294901760, %v435_v62  ;;  %v434_v12 = vld [vmem:[%s4558_s1] sm:$0xff] }
  0x2d   : > { %4773 = vst [vmem:[#allocation32_spill] sm:$0xff] %v3434_v51  ;;  %2459 = vmatprep.subr.mxu1 %v990_v29  ;;  %v997_v39 = vand.u32 4294901760, %v996_v18  ;;  %v884_v42 = vsub.f32 %v3414_v24, %v4597_v47  ;;  %2385 = vmatprep.subr.mxu0 %v3434_v51  ;;  %v3460_v57 = vsub.f32 %v452_v45, %v3434_v51  ;;  %v4779_v29 = vand.u32 4294901760, %v3427_v61 }
  0x2e   : > { %4774 = vst [vmem:[#allocation33_spill] sm:$0xff] %v3437_v25  ;;  %4775 = vst [vmem:[#allocation34_spill] sm:$0xff] %v3443_v2  ;;  %2460 = vmatpush3.msra.mxu1 %v878_v46  ;;  %2386 = vmatpush3.msra.mxu0 %v3443_v2  ;;  %v3470_v47 = vsub.f32 %v436_v13, %v3443_v2  ;;  %v3473_v41 = vsub.f32 %v451_v23, %v3445_v48  ;;  %v3475_v31 = vand.u32 4294901760, %v450_v28  ;;  %v210_v13 = vld [vmem:[%s3452_s8 + $0x8] sm:$0xff]  ;;  %v209_v23 = vld [vmem:[%s3452_s8] sm:$0xff] }
  0x2f   : > { %4776 = vst [vmem:[#allocation35_spill] sm:$0xff] %v3445_v48  ;;  %4777 = vst [vmem:[#allocation36_spill] sm:$0xff] %v3447_v34  ;;  %v1003_v18 = vsub.f32 %v3427_v61, %v4779_v29  ;;  %2461 = vmatprep.subr.mxu1 %v997_v39  ;;  %v885_v45 = vand.u32 4294901760, %v884_v42  ;;  %v4783_v51 = vand.u32 4294901760, %v3437_v25  ;;  %v4608_v24 = vand.u32 4294901760, %v3460_v57  ;;  %2387 = vmatprep.subr.mxu0 %v3445_v48 }
  0x30   : > { %4778 = vst [vmem:[#allocation37_spill] sm:$0xff] %v3460_v57  ;;  %4780 = vst [vmem:[#allocation38_spill] sm:$0xff] %v3470_v47  ;;  %v3483_v29 = vsub.f32 %v435_v62, %v3447_v34  ;;  %2388 = vmatpush3.msra.mxu0 %v3447_v34  ;;  %v3489_v39 = vand.u32 4294901760, %v434_v12  ;;  %v4787_v42 = vand.u32 4294901760, %v3470_v47  ;;  %v242_v34 = vmax.f32 %v210_v13, 1e-06 }
  0x31   : > { %4781 = vst [vmem:[#allocation39_spill] sm:$0xff] %v3473_v41  ;;  %4782 = vst [vmem:[#allocation40_spill] sm:$0xff] %v3475_v31  ;;  %v891_v46 = vsub.f32 %v3437_v25, %v4783_v51  ;;  %v1004_v2 = vand.u32 4294901760, %v1003_v18  ;;  %2462 = vmatpush3.msra.mxu1 %v885_v45  ;;  %v1010_v48 = vsub.f32 %v3460_v57, %v4608_v24  ;;  %2389 = vmatprep.subr.mxu0 %v3475_v31  ;;  %v212_v62 = vld [vmem:[%s3452_s8 + $0x18] sm:$0xff] }
  0x32   : > { %4784 = vst [vmem:[#allocation41_spill] sm:$0xff] %v3483_v29  ;;  %4785 = vst [vmem:[#allocation42_spill] sm:$0xff] %v3489_v39  ;;  %v3497_v18 = vsub.f32 %v450_v28, %v3475_v31  ;;  %v898_v45 = vsub.f32 %v3470_v47, %v4787_v42  ;;  %2390 = vmatpush3.msra.mxu0 %v3489_v39  ;;  %v4789_v28 = vand.u32 4294901760, %v3483_v29  ;;  %v213_v47 = vld [vmem:[%s3452_s8 + $0x20] sm:$0xff]  ;;  %2849 = vlog2.f32 %v242_v34 }
  0x33   : > { %v892_v51 = vand.u32 4294901760, %v891_v46  ;;  %2463 = vmatprep.subr.mxu1 %v1004_v2  ;;  %v4788_v46 = vand.u32 4294901760, %v3473_v41  ;;  %v1011_v57 = vand.u32 4294901760, %v1010_v48  ;;  %v3513_v42 = vsub.f32 %v434_v12, %v3489_v39  ;;  %2519 = vmatprep.subr.mxu0 %v3125_v14  ;;  %v218_v14 = vld [vmem:[%s3452_s8 + $0x48] sm:$0xff] }
  0x34   : > { %4786 = vst [vmem:[#allocation43_spill] sm:$0xff] %v3497_v18  ;;  %v905_v31 = vsub.f32 %v3483_v29, %v4789_v28  ;;  %v4628_v2 = vand.u32 4294901760, %v3497_v18  ;;  %v899_v13 = vand.u32 4294901760, %v898_v45  ;;  %v241_v48 = vmax.f32 %v209_v23, 1e-06  ;;  %v215_v29 = vld [vmem:[%s3452_s8 + $0x30] sm:$0xff] }
  0x35   : > { %v1017_v24 = vsub.f32 %v3473_v41, %v4788_v46  ;;  %2464 = vmatpush3.msra.mxu1 %v892_v51  ;;  %4790 = vst [vmem:[#allocation44_spill] sm:$0xff] %v3513_v42  ;;  %v211_v46 = vld [vmem:[%s3452_s8 + $0x10] sm:$0xff]  ;;  %v214_v41 = vld [vmem:[%s3452_s8 + $0x28] sm:$0xff]  ;;  %v216_v51 = vld [vmem:[%s3452_s8 + $0x38] sm:$0xff]  ;;  %v4629_v12 = vand.u32 4294901760, %v3513_v42 }
  0x36   : > { %2465 = vmatprep.subr.mxu1 %v1011_v57  ;;  %v906_v61 = vand.u32 4294901760, %v905_v31  ;;  %v1024_v28 = vsub.f32 %v3497_v18, %v4628_v2  ;;  %v244_v39 = vmax.f32 %v212_v62, 1e-06  ;;  %2851 = vlog2.f32 %v241_v48  ;;  %v217_v2 = vld [vmem:[%s3452_s8 + $0x40] sm:$0xff]  ;;  %v222_v48 = vld [vmem:[%s3452_s8 + $0x68] sm:$0xff] }
  0x37   : > { %v1018_v25 = vand.u32 4294901760, %v1017_v24  ;;  %2466 = vmatpush3.msra.mxu1 %v899_v13  ;;  %v243_v45 = vmax.f32 %v211_v46, 1e-06  ;;  %v246_v24 = vmax.f32 %v214_v41, 1e-06  ;;  %v912_v31 = vsub.f32 %v3513_v42, %v4629_v12  ;;  %v220_v13 = vld [vmem:[%s3452_s8 + $0x58] sm:$0xff] }
  0x38   : > { %v245_v34 = vmax.f32 %v213_v47, 1e-06  ;;  %v1025_v57 = vand.u32 4294901760, %v1024_v28  ;;  %2853 = vlog2.f32 %v244_v39  ;;  %v248_v23 = vmax.f32 %v216_v51, 1e-06  ;;  %v221_v39 = vld [vmem:[%s3452_s8 + $0x60] sm:$0xff] }
  0x39   : > { %2467 = vmatprep.subr.mxu1 %v1018_v25  ;;  %2855 = vlog2.f32 %v243_v45  ;;  %v247_v62 = vmax.f32 %v215_v29, 1e-06  ;;  %v913_v47 = vand.u32 4294901760, %v912_v31  ;;  %v250_v41 = vmax.f32 %v218_v14, 1e-06  ;;  %v219_v25 = vld [vmem:[%s3452_s8 + $0x50] sm:$0xff] }
  0x3a   : > { %2468 = vmatpush3.msra.mxu1 %v906_v61  ;;  %2857 = vlog2.f32 %v246_v24  ;;  %v249_v46 = vmax.f32 %v217_v2, 1e-06  ;;  %v252_v61 = vmax.f32 %v220_v13, 1e-06  ;;  %v251_v29 = vmax.f32 %v219_v25, 1e-06 }
  0x3b   : > { %2469 = vmatprep.subr.mxu1 %v1025_v57  ;;  %2859 = vlog2.f32 %v245_v34  ;;  %v224_v51 = vld [vmem:[%s3452_s8 + $0x78] sm:$0xff]  ;;  %v254_v28 = vmax.f32 %v222_v48, 1e-06  ;;  %v223_v45 = vld [vmem:[%s3452_s8 + $0x70] sm:$0xff]  ;;  %v253_v14 = vmax.f32 %v221_v39, 1e-06  ;;  %v3540_v13 = vstv %s205_s10 }
  0x3c   : > { %2470 = vmatpush3.msra.mxu1 %v913_v47  ;;  %2861 = vlog2.f32 %v248_v23  ;;  %v226_v24 = vld [vmem:[%s3452_s8 + $0x88] sm:$0xff]  ;;  %v256_v2 = vmax.f32 %v224_v51, 1e-06  ;;  %v225_v34 = vld [vmem:[%s3452_s8 + $0x80] sm:$0xff]  ;;  %v255_v57 = vmax.f32 %v223_v45, 1e-06 }
  0x3d   : > { %2599 = vmatprep.subr.mxu1 %v3096_v3  ;;  %2863 = vlog2.f32 %v247_v62  ;;  %v228_v31 = vld [vmem:[%s3452_s8 + $0x98] sm:$0xff]  ;;  %4791 = vst [vmem:[#allocation45_spill] sm:$0xff] %v3540_v13  ;;  %v258_v62 = vmax.f32 %v226_v24, 1e-06  ;;  %v227_v25 = vld [vmem:[%s3452_s8 + $0x90] sm:$0xff] }
  0x3e   : > { %2865 = vlog2.f32 %v250_v41  ;;  %v257_v41 = vmax.f32 %v225_v34, 1e-06  ;;  %v259_v12 = vmax.f32 %v227_v25, 1e-06 }
  0x3f   : > { %2867 = vlog2.f32 %v249_v46  ;;  %v2850_v23 = vpop.eup %2849  ;;  %v260_v46 = vmax.f32 %v228_v31, 1e-06 }
  0x40   : > { %2869 = vlog2.f32 %v252_v61  ;;  %v276_v47 = vmul.f32 0.6931472, %v2850_v23 }
  0x41   : > { %2871 = vlog2.f32 %v251_v29 }
  0x42   : > { %2873 = vlog2.f32 %v254_v28  ;;  %v339_v61 = vmul.f32 %v276_v47, %v3540_v13 }
  0x43   : > { %2875 = vlog2.f32 %v253_v14  ;;  %v2852_v48 = vpop.eup %2851 }
  0x44   : > { %2877 = vlog2.f32 %v256_v2  ;;  %v274_v51 = vmul.f32 0.6931472, %v2852_v48  ;;  %v372_v42 = vmul.f32 1.442695, %v339_v61 }
  0x45   : > { %v2854_v39 = vpop.eup %2853  ;;  %2879 = vlog2.f32 %v255_v57 }
  0x46   : > { %v2856_v29 = vpop.eup %2855  ;;  %v280_v45 = vmul.f32 0.6931472, %v2854_v39  ;;  %2881 = vlog2.f32 %v258_v62  ;;  %v338_v28 = vmul.f32 %v274_v51, %v3540_v13 }
  0x47   : > { %v2858_v3 = vpop.eup %2857  ;;  %v278_v24 = vmul.f32 0.6931472, %v2856_v29  ;;  %2883 = vlog2.f32 %v257_v41 }
  0x48   : > { %v2860_v14 = vpop.eup %2859  ;;  %v341_v34 = vmul.f32 %v280_v45, %v3540_v13  ;;  %v284_v2 = vmul.f32 0.6931472, %v2858_v3  ;;  %2885 = vlog2.f32 %v260_v46  ;;  %v370_v23 = vmul.f32 1.442695, %v338_v28 }
  0x49   : > { %v2862_v31 = vpop.eup %2861  ;;  %2887 = vpow2.f32 %v372_v42  ;;  %v340_v57 = vmul.f32 %v278_v24, %v3540_v13  ;;  %v282_v47 = vmul.f32 0.6931472, %v2860_v14 }
  0x4a   : > { %v2864_v48 = vpop.eup %2863  ;;  %v376_v62 = vmul.f32 1.442695, %v341_v34  ;;  %v343_v25 = vmul.f32 %v284_v2, %v3540_v13  ;;  %v288_v39 = vmul.f32 0.6931472, %v2862_v31  ;;  %2889 = vlog2.f32 %v259_v12 }
  0x4b   : > { %v2866_v61 = vpop.eup %2865  ;;  %2891 = vpow2.f32 %v370_v23  ;;  %v374_v41 = vmul.f32 1.442695, %v340_v57  ;;  %v342_v51 = vmul.f32 %v282_v47, %v3540_v13  ;;  %v286_v29 = vmul.f32 0.6931472, %v2864_v48 }
  0x4c   : > { %v2868_v3 = vpop.eup %2867  ;;  %2893 = vpow2.f32 %v376_v62  ;;  %v380_v46 = vmul.f32 1.442695, %v343_v25  ;;  %v345_v42 = vmul.f32 %v288_v39, %v3540_v13  ;;  %v292_v45 = vmul.f32 0.6931472, %v2866_v61 }
  0x4d   : > { %v2870_v28 = vpop.eup %2869  ;;  %2895 = vpow2.f32 %v374_v41  ;;  %v378_v24 = vmul.f32 1.442695, %v342_v51  ;;  %v344_v14 = vmul.f32 %v286_v29, %v3540_v13  ;;  %v290_v34 = vmul.f32 0.6931472, %v2868_v3 }
  0x4e   : > { %v2872_v2 = vpop.eup %2871  ;;  %2897 = vpow2.f32 %v380_v46  ;;  %v384_v12 = vmul.f32 1.442695, %v345_v42  ;;  %v347_v31 = vmul.f32 %v292_v45, %v3540_v13  ;;  %v296_v23 = vmul.f32 0.6931472, %v2870_v28 }
  0x4f   : > { %v2874_v57 = vpop.eup %2873  ;;  %2899 = vpow2.f32 %v378_v24  ;;  %v382_v47 = vmul.f32 1.442695, %v344_v14  ;;  %v346_v48 = vmul.f32 %v290_v34, %v3540_v13  ;;  %v294_v62 = vmul.f32 0.6931472, %v2872_v2 }
  0x50   : > { %v2876_v25 = vpop.eup %2875  ;;  %2901 = vpow2.f32 %v384_v12  ;;  %v388_v39 = vmul.f32 1.442695, %v347_v31  ;;  %v349_v61 = vmul.f32 %v296_v23, %v3540_v13  ;;  %v300_v41 = vmul.f32 0.6931472, %v2874_v57 }
  0x51   : > { %v2878_v51 = vpop.eup %2877  ;;  %2903 = vpow2.f32 %v382_v47  ;;  %v386_v29 = vmul.f32 1.442695, %v346_v48  ;;  %v348_v3 = vmul.f32 %v294_v62, %v3540_v13  ;;  %v298_v46 = vmul.f32 0.6931472, %v2876_v25 }
  0x52   : > { %v2880_v42 = vpop.eup %2879  ;;  %2905 = vpow2.f32 %v388_v39  ;;  %v392_v45 = vmul.f32 1.442695, %v349_v61  ;;  %v351_v28 = vmul.f32 %v300_v41, %v3540_v13  ;;  %v304_v24 = vmul.f32 0.6931472, %v2878_v51 }
  0x53   : > { %v2882_v14 = vpop.eup %2881  ;;  %2907 = vpow2.f32 %v386_v29  ;;  %v390_v34 = vmul.f32 1.442695, %v348_v3  ;;  %v350_v2 = vmul.f32 %v298_v46, %v3540_v13  ;;  %v302_v12 = vmul.f32 0.6931472, %v2880_v42 }
  0x54   : > { %v2884_v31 = vpop.eup %2883  ;;  %2909 = vpow2.f32 %v392_v45  ;;  %v396_v23 = vmul.f32 1.442695, %v351_v28  ;;  %v353_v57 = vmul.f32 %v304_v24, %v3540_v13  ;;  %v308_v47 = vmul.f32 0.6931472, %v2882_v14 }
  0x55   : > { %v2886_v48 = vpop.eup %2885  ;;  %2911 = vpow2.f32 %v390_v34  ;;  %v394_v62 = vmul.f32 1.442695, %v350_v2  ;;  %v352_v25 = vmul.f32 %v302_v12, %v3540_v13  ;;  %v306_v39 = vmul.f32 0.6931472, %v2884_v31 }
  0x56   : > { %v2888_v61 = vpop.eup %2887  ;;  %2913 = vpow2.f32 %v396_v23  ;;  %v400_v41 = vmul.f32 1.442695, %v353_v57  ;;  %v355_v51 = vmul.f32 %v308_v47, %v3540_v13  ;;  %v312_v29 = vmul.f32 0.6931472, %v2886_v48 }
  0x57   : > { %v2890_v3 = vpop.eup %2889  ;;  %v3560_v46 = vand.u32 4294901760, %v2888_v61  ;;  %2915 = vpow2.f32 %v394_v62  ;;  %v398_v42 = vmul.f32 1.442695, %v352_v25  ;;  %v354_v45 = vmul.f32 %v306_v39, %v3540_v13 }
  0x58   : > { %v2892_v28 = vpop.eup %2891  ;;  %2917 = vpow2.f32 %v400_v41  ;;  %v404_v24 = vmul.f32 1.442695, %v355_v51  ;;  %v357_v14 = vmul.f32 %v312_v29, %v3540_v13  ;;  %v310_v34 = vmul.f32 0.6931472, %v2890_v3 }
  0x59   : > { %4792 = vst [vmem:[#allocation46_spill] sm:$0xff] %v3560_v46  ;;  %v2894_v2 = vpop.eup %2893  ;;  %v3565_v12 = vsub.f32 %v2888_v61, %v3560_v46  ;;  %1028 = vmatprep.mubr.f32.mxu1 %v3560_v46  ;;  %v3568_v31 = vand.u32 4294901760, %v2892_v28  ;;  %2919 = vpow2.f32 %v398_v42  ;;  %v402_v23 = vmul.f32 1.442695, %v354_v45 }
  0x5a   : > { %v2896_v57 = vpop.eup %2895  ;;  %v3570_v47 = vand.u32 4294901760, %v2894_v2  ;;  %2921 = vpow2.f32 %v404_v24  ;;  %v408_v48 = vmul.f32 1.442695, %v357_v14  ;;  %v356_v62 = vmul.f32 %v310_v34, %v3540_v13 }
  0x5b   : > { %4793 = vst [vmem:[#allocation47_spill] sm:$0xff] %v3568_v31  ;;  %v2898_v25 = vpop.eup %2897  ;;  %v4633_v39 = vand.u32 4294901760, %v3565_v12  ;;  %v3575_v41 = vsub.f32 %v2892_v28, %v3568_v31  ;;  %1030 = vmatmul.mubr.f32.vlgmr.msra.gmra.mxu1 %v3568_v31  ;;  %v3578_v61 = vand.u32 4294901760, %v2896_v57  ;;  %2923 = vpow2.f32 %v402_v23 }
  0x5c   : > { %4794 = vst [vmem:[#allocation48_spill] sm:$0xff] %v3570_v47  ;;  %v2900_v51 = vpop.eup %2899  ;;  %2600 = vmatpush3.msra.mxu1 %v3098_v4  ;;  %v3582_v29 = vsub.f32 %v2894_v2, %v3570_v47  ;;  %1035 = vmatprep.mubr.f32.mxu1 %v3570_v47  ;;  %v3585_v3 = vand.u32 4294901760, %v2898_v25  ;;  %2925 = vpow2.f32 %v408_v48  ;;  %v406_v42 = vmul.f32 1.442695, %v356_v62 }
  0x5d   : > { %4795 = vst [vmem:[#allocation49_spill] sm:$0xff] %v3578_v61  ;;  %v2902_v45 = vpop.eup %2901  ;;  %v565_v28 = vsub.f32 %v3565_v12, %v4633_v39  ;;  %v3592_v14 = vsub.f32 %v2896_v57, %v3578_v61  ;;  %2601 = vmatprep.subr.mxu1 %v3100_v5  ;;  %v3595_v34 = vand.u32 4294901760, %v2900_v51  ;;  %v4802_v57 = vand.u32 4294901760, %v3575_v41 }
  0x5e   : > { %4796 = vst [vmem:[#allocation50_spill] sm:$0xff] %v3582_v29  ;;  %4797 = vst [vmem:[#allocation51_spill] sm:$0xff] %v3585_v3  ;;  %v2904_v2 = vpop.eup %2903  ;;  %2602 = vmatpush3.msra.mxu1 %v3111_v9  ;;  %v3600_v48 = vsub.f32 %v2898_v25, %v3585_v3  ;;  %v3602_v62 = vand.u32 4294901760, %v2902_v45  ;;  %2927 = vpow2.f32 %v406_v42  ;;  %v4804_v46 = vand.u32 4294901760, %v3582_v29 }
  0x5f   : > { %4798 = vst [vmem:[#allocation52_spill] sm:$0xff] %v3592_v14  ;;  %4799 = vst [vmem:[#allocation53_spill] sm:$0xff] %v3595_v34  ;;  %v2906_v39 = vpop.eup %2905  ;;  %v566_v24 = vand.u32 4294901760, %v565_v28  ;;  %v571_v47 = vsub.f32 %v3575_v41, %v4802_v57  ;;  %1037 = vmatmul.mubr.f32.gmra.mxu1 %v3578_v61  ;;  %v3610_v23 = vsub.f32 %v2900_v51, %v3595_v34  ;;  %2603 = vmatprep.subr.mxu1 %v3113_v10 }
  0x60   : > { %4800 = vst [vmem:[#allocation54_spill] sm:$0xff] %v3600_v48  ;;  %4801 = vst [vmem:[#allocation55_spill] sm:$0xff] %v3602_v62  ;;  %v2908_v25 = vpop.eup %2907  ;;  %v580_v42 = vsub.f32 %v3582_v29, %v4804_v46  ;;  %1042 = vmatprep.mubr.f32.mxu1 %v3585_v3  ;;  %2604 = vmatpush3.msra.mxu1 %v3115_v11  ;;  %v3620_v57 = vsub.f32 %v2902_v45, %v3602_v62  ;;  %v3622_v31 = vand.u32 4294901760, %v2904_v2 }
  0x61   : > { %4803 = vst [vmem:[#allocation56_spill] sm:$0xff] %v3610_v23  ;;  %v2910_v51 = vpop.eup %2909  ;;  %567 = vmatprep.mubr.f32.mxu0 %v566_v24  ;;  %v572_v61 = vand.u32 4294901760, %v571_v47  ;;  %v4807_v10 = vand.u32 4294901760, %v3592_v14  ;;  %v4654_v46 = vand.u32 4294901760, %v3610_v23  ;;  %2605 = vmatprep.subr.mxu1 %v3133_v17  ;;  %v3629_v28 = vand.u32 4294901760, %v2906_v39 }
  0x62   : > { %4805 = vst [vmem:[#allocation57_spill] sm:$0xff] %v3620_v57  ;;  %4806 = vst [vmem:[#allocation58_spill] sm:$0xff] %v3622_v31  ;;  %v2912_v3 = vpop.eup %2911  ;;  %v581_v11 = vand.u32 4294901760, %v580_v42  ;;  %v4809_v45 = vand.u32 4294901760, %v3600_v48  ;;  %v3636_v47 = vsub.f32 %v2904_v2, %v3622_v31  ;;  %2606 = vmatpush3.msra.mxu1 %v3148_v22  ;;  %v4813_v22 = vand.u32 4294901760, %v3620_v57 }
  0x63   : > { %v586_v9 = vsub.f32 %v3592_v14, %v4807_v10  ;;  %4808 = vst [vmem:[#allocation59_spill] sm:$0xff] %v3629_v28  ;;  %v2914_v10 = vpop.eup %2913  ;;  %573 = vmatmul.mubr.f32.vlgmr.msra.gmra.mxu0 %v572_v61  ;;  %v601_v17 = vsub.f32 %v3610_v23, %v4654_v46  ;;  %1044 = vmatmul.mubr.f32.gmra.mxu1 %v3595_v34  ;;  %v3712_v23 = vld [vmem:[%s3452_s8 + $0xc8] sm:$0xff] }
  0x64   : > { %v595_v5 = vsub.f32 %v3600_v48, %v4809_v45  ;;  %4810 = vst [vmem:[#allocation60_spill] sm:$0xff] %v3636_v47  ;;  %v3644_v42 = vsub.f32 %v2906_v39, %v3629_v28  ;;  %v3646_v45 = vand.u32 4294901760, %v2908_v25  ;;  %v2916_v29 = vpop.eup %2915  ;;  %2520 = vmatpush3.msra.mxu0 %v3128_v15  ;;  %582 = vmatprep.mubr.f32.mxu0 %v581_v11  ;;  %v3653_v48 = vand.u32 4294901760, %v2910_v51  ;;  %v231_v15 = vld [vmem:[%s3452_s8 + $0xb0] sm:$0xff] }
  0x65   : > { %v587_v24 = vand.u32 4294901760, %v586_v9  ;;  %v610_v9 = vsub.f32 %v3620_v57, %v4813_v22  ;;  %v2918_v46 = vpop.eup %2917  ;;  %2521 = vmatprep.subr.mxu0 %v3131_v16  ;;  %1049 = vmatprep.mubr.f32.mxu1 %v3602_v62  ;;  %v602_v22 = vand.u32 4294901760, %v601_v17  ;;  %v3670_v62 = vand.u32 4294901760, %v2914_v10 }
  0x66   : > { %4811 = vst [vmem:[#allocation61_spill] sm:$0xff] %v3644_v42  ;;  %4812 = vst [vmem:[#allocation62_spill] sm:$0xff] %v3646_v45  ;;  %v596_v2 = vand.u32 4294901760, %v595_v5  ;;  %v3659_v34 = vsub.f32 %v2908_v25, %v3646_v45  ;;  %v3661_v5 = vand.u32 4294901760, %v2912_v3  ;;  %v3663_v11 = vpop.eup %2919  ;;  %2522 = vmatpush3.msra.mxu0 %v3140_v19  ;;  %2607 = vmatprep.subr.mxu1 %v3161_v30  ;;  %v4819_v25 = vand.u32 4294901760, %v3636_v47  ;;  %v230_v30 = vld [vmem:[%s3452_s8 + $0xa8] sm:$0xff] }
  0x67   : > { %4814 = vst [vmem:[#allocation63_spill] sm:$0xff] %v3653_v48  ;;  %v611_v61 = vand.u32 4294901760, %v610_v9  ;;  %v3668_v57 = vsub.f32 %v2910_v51, %v3653_v48  ;;  %4818 = vst [vmem:[#allocation67_spill] sm:$0xff] %v3670_v62  ;;  %v3672_v39 = vpop.eup %2921  ;;  %588 = vmatmul.mubr.f32.gmra.mxu0 %v587_v24  ;;  %2523 = vmatprep.subr.mxu0 %v3143_v20  ;;  %v3682_v51 = vand.u32 4294901760, %v2916_v29  ;;  %v4821_v24 = vand.u32 4294901760, %v3644_v42 }
  0x68   : > { %4815 = vst [vmem:[#allocation64_spill] sm:$0xff] %v3659_v34  ;;  %4816 = vst [vmem:[#allocation65_spill] sm:$0xff] %v3661_v5  ;;  %v616_v16 = vsub.f32 %v3636_v47, %v4819_v25  ;;  %v3680_v9 = vsub.f32 %v2912_v3, %v3661_v5  ;;  %v3685_v19 = vpop.eup %2923  ;;  %597 = vmatprep.mubr.f32.mxu0 %v596_v2  ;;  %2524 = vmatpush3.msra.mxu0 %v3146_v21  ;;  %v3695_v3 = vand.u32 4294901760, %v2918_v46  ;;  %v229_v2 = vld [vmem:[%s3452_s8 + $0xa0] sm:$0xff]  ;;  %v232_v21 = vld [vmem:[%s3452_s8 + $0xb8] sm:$0xff] }
  0x69   : > { %4817 = vst [vmem:[#allocation66_spill] sm:$0xff] %v3668_v57  ;;  %4820 = vst [vmem:[#allocation68_spill] sm:$0xff] %v3682_v51  ;;  %v625_v20 = vsub.f32 %v3644_v42, %v4821_v24  ;;  %v3693_v17 = vsub.f32 %v2914_v10, %v3670_v62  ;;  %v3697_v47 = vpop.eup %2925  ;;  %2525 = vmatprep.subr.mxu0 %v3155_v26  ;;  %1051 = vmatmul.mubr.f32.gmra.mxu1 %v3622_v31  ;;  %v262_v42 = vmax.f32 %v230_v30, 1e-06  ;;  %v233_v30 = vld [vmem:[%s3452_s8 + $0xc0] sm:$0xff] }
  0x6a   : > { %4822 = vst [vmem:[#allocation69_spill] sm:$0xff] %v3695_v3  ;;  %2526 = vmatpush3.msra.mxu0 %v3185_v38  ;;  %1056 = vmatprep.mubr.f32.mxu1 %v3629_v28  ;;  %v3708_v25 = vsub.f32 %v2916_v29, %v3682_v51  ;;  %v617_v31 = vand.u32 4294901760, %v616_v16  ;;  %v4823_v38 = vand.u32 4294901760, %v3659_v34  ;;  %v4824_v24 = vand.u32 4294901760, %v3668_v57 }
  0x6b   : > { %v3714_v26 = vpop.eup %2927  ;;  %603 = vmatmul.mubr.f32.gmra.mxu0 %v602_v22  ;;  %2527 = vmatprep.subr.mxu0 %v3215_v55  ;;  %v3724_v29 = vand.u32 4294901760, %v3663_v11  ;;  %v626_v14 = vand.u32 4294901760, %v625_v20  ;;  %v3729_v16 = vsub.f32 %v2918_v46, %v3695_v3  ;;  %v261_v22 = vmax.f32 %v229_v2, 1e-06 }
  0x6c   : > { %v631_v28 = vsub.f32 %v3659_v34, %v4823_v38  ;;  %v640_v10 = vsub.f32 %v3668_v57, %v4824_v24  ;;  %612 = vmatprep.mubr.f32.mxu0 %v611_v61  ;;  %2528 = vmatpush3.msra.mxu0 %v3234_v63  ;;  %v3732_v38 = vand.u32 4294901760, %v3672_v39  ;;  %v264_v24 = vmax.f32 %v232_v21, 1e-06  ;;  %v235_v21 = vld [vmem:[%s3452_s8 + $0xd0] sm:$0xff] }
  0x6d   : > { %4825 = vst [vmem:[#allocation70_spill] sm:$0xff] %v3724_v29  ;;  %1058 = vmatmul.mubr.f32.gmra.mxu1 %v3646_v45  ;;  %2529 = vmatprep.subr.mxu0 %v3237_v0  ;;  %v263_v57 = vmax.f32 %v231_v15, 1e-06  ;;  %v266_v20 = vmax.f32 %v3712_v23, 1e-06  ;;  %v4827_v46 = vand.u32 4294901760, %v3680_v9  ;;  %2929 = vlog2.f32 %v262_v42 }
  0x6e   : > { %4826 = vst [vmem:[#allocation71_spill] sm:$0xff] %v3732_v38  ;;  %2608 = vmatpush3.msra.mxu1 %v3212_v54  ;;  %1063 = vmatprep.mubr.f32.mxu1 %v3653_v48  ;;  %v4828_v63 = vand.u32 4294901760, %v3693_v17  ;;  %v4692_v45 = vand.u32 4294901760, %v3708_v25  ;;  %v265_v34 = vmax.f32 %v233_v30, 1e-06  ;;  %v236_v0 = vld [vmem:[%s3452_s8 + $0xd8] sm:$0xff]  ;;  %v3752_v48 = vsub.f32 %v3663_v11, %v3724_v29 }
  0x6f   : > { %v646_v61 = vsub.f32 %v3680_v9, %v4827_v46  ;;  %v238_v15 = vld [vmem:[%s3452_s8 + $0xe8] sm:$0xff]  ;;  %618 = vmatmul.mubr.f32.gmra.mxu0 %v617_v31  ;;  %v632_v23 = vand.u32 4294901760, %v631_v28  ;;  %v641_v55 = vand.u32 4294901760, %v640_v10  ;;  %2609 = vmatprep.subr.mxu1 %v3217_v56  ;;  %v3755_v46 = vand.u32 4294901760, %v3685_v19 }
  0x70   : > { %v655_v2 = vsub.f32 %v3693_v17, %v4828_v63  ;;  %627 = vmatprep.mubr.f32.mxu0 %v626_v14  ;;  %2530 = vmatpush3.msra.mxu0 %v3243_v6  ;;  %v3761_v31 = vsub.f32 %v3672_v39, %v3732_v38  ;;  %v3764_v28 = vand.u32 4294901760, %v3697_v47  ;;  %2931 = vlog2.f32 %v261_v22  ;;  %v237_v39 = vld [vmem:[%s3452_s8 + $0xe0] sm:$0xff] }
  0x71   : > { %4829 = vst [vmem:[#allocation72_spill] sm:$0xff] %v3755_v46  ;;  %1065 = vmatmul.mubr.f32.gmra.mxu1 %v3661_v5  ;;  %2531 = vmatprep.subr.mxu0 %v3246_v7  ;;  %v268_v11 = vmax.f32 %v236_v0, 1e-06  ;;  %v267_v14 = vmax.f32 %v235_v21, 1e-06  ;;  %v647_v30 = vand.u32 4294901760, %v646_v61  ;;  %v661_v42 = vsub.f32 %v3708_v25, %v4692_v45 }
  0x72   : > { %4830 = vst [vmem:[#allocation73_spill] sm:$0xff] %v3764_v28  ;;  %v270_v10 = vmax.f32 %v238_v15, 1e-06  ;;  %2610 = vmatpush3.msra.mxu1 %v3222_v58  ;;  %v656_v63 = vand.u32 4294901760, %v655_v2  ;;  %1070 = vmatprep.mubr.f32.mxu1 %v3670_v62  ;;  %2933 = vlog2.f32 %v264_v24  ;;  %v4697_v0 = vand.u32 4294901760, %v3752_v48  ;;  %v240_v2 = vld [vmem:[%s3452_s8 + $0xf8] sm:$0xff] }
  0x73   : > { %633 = vmatmul.mubr.f32.gmra.mxu0 %v632_v23  ;;  %2611 = vmatprep.subr.mxu1 %v3224_v59  ;;  %v3778_v22 = vsub.f32 %v3685_v19, %v3755_v46  ;;  %v3781_v61 = vand.u32 4294901760, %v3714_v26  ;;  %2935 = vlog2.f32 %v263_v57  ;;  %v239_v21 = vld [vmem:[%s3452_s8 + $0xf0] sm:$0xff]  ;;  %v4832_v24 = vand.u32 4294901760, %v3729_v16 }
  0x74   : > { %642 = vmatprep.mubr.f32.mxu0 %v641_v55  ;;  %2532 = vmatpush3.msra.mxu0 %v3249_v8  ;;  %v4696_v23 = vand.u32 4294901760, %v3761_v31  ;;  %v3792_v45 = vsub.f32 %v3697_v47, %v3764_v28  ;;  %2937 = vlog2.f32 %v266_v20  ;;  %v269_v19 = vmax.f32 %v237_v39, 1e-06 }
  0x75   : > { %4831 = vst [vmem:[#allocation74_spill] sm:$0xff] %v3781_v61  ;;  %v670_v15 = vsub.f32 %v3729_v16, %v4832_v24  ;;  %1072 = vmatmul.mubr.f32.gmra.mxu1 %v3682_v51  ;;  %2533 = vmatprep.subr.mxu0 %v3267_v37  ;;  %2939 = vlog2.f32 %v265_v34  ;;  %v662_v55 = vand.u32 4294901760, %v661_v42  ;;  %v272_v57 = vmax.f32 %v240_v2, 1e-06 }
  0x76   : > { %2612 = vmatpush3.msra.mxu1 %v3226_v60  ;;  %1077 = vmatprep.mubr.f32.mxu1 %v3695_v3  ;;  %2941 = vlog2.f32 %v268_v11  ;;  %v271_v24 = vmax.f32 %v239_v21, 1e-06  ;;  %v676_v47 = vsub.f32 %v3752_v48, %v4697_v0  ;;  %v4694_v20 = vand.u32 4294901760, %v3778_v22  ;;  %v4834_v0 = vld [vmem:[#allocation22_spill] sm:$0xff]  ;;  %v4841_v3 = vld [vmem:[#allocation28_spill] sm:$0xff] }
  0x77   : > { %648 = vmatmul.mubr.f32.gmra.mxu0 %v647_v30  ;;  %2613 = vmatprep.subr.mxu1 %v3239_v1  ;;  %v3805_v34 = vsub.f32 %v3714_v26, %v3781_v61  ;;  %2943 = vlog2.f32 %v267_v14  ;;  %v671_v42 = vand.u32 4294901760, %v670_v15  ;;  %v685_v11 = vsub.f32 %v3761_v31, %v4696_v23 }
  0x78   : > { %657 = vmatprep.mubr.f32.mxu0 %v656_v63  ;;  %2534 = vmatpush3.msra.mxu0 %v3301_v52  ;;  %v4693_v30 = vand.u32 4294901760, %v3792_v45  ;;  %2945 = vlog2.f32 %v270_v10  ;;  %v677_v26 = vand.u32 4294901760, %v676_v47  ;;  %v691_v63 = vsub.f32 %v3778_v22, %v4694_v20 }
  0x79   : > { %1079 = vmatmul.mubr.f32.gmra.mxu1 %v3724_v29  ;;  %2535 = vmatprep.subr.mxu0 %v3321_v35  ;;  %2947 = vlog2.f32 %v269_v19  ;;  %v4695_v14 = vand.u32 4294901760, %v3805_v34  ;;  %v686_v10 = vand.u32 4294901760, %v685_v11 }
  0x7a   : > { %2614 = vmatpush3.msra.mxu1 %v3260_v32  ;;  %1084 = vmatprep.mubr.f32.mxu1 %v3732_v38  ;;  %2949 = vlog2.f32 %v272_v57  ;;  %v700_v39 = vsub.f32 %v3792_v45, %v4693_v30  ;;  %v2930_v2 = vpop.eup %2929 }
  0x7b   : > { %663 = vmatmul.mubr.f32.gmra.mxu0 %v662_v55  ;;  %2615 = vmatprep.subr.mxu1 %v3279_v43  ;;  %2951 = vlog2.f32 %v271_v24  ;;  %v316_v15 = vmul.f32 0.6931472, %v2930_v2  ;;  %v692_v55 = vand.u32 4294901760, %v691_v63  ;;  %v706_v57 = vsub.f32 %v3805_v34, %v4695_v14  ;;  %v4833_v14 = vld [vmem:[#allocation25_spill] sm:$0xff] }
  0x7c   : > { %672 = vmatprep.mubr.f32.mxu0 %v671_v42  ;;  %2536 = vmatpush3.msra.mxu0 %v3326_v44  ;;  %v701_v42 = vand.u32 4294901760, %v700_v39 }
  0x7d   : > { %1086 = vmatmul.mubr.f32.gmra.mxu1 %v3755_v46  ;;  %2537 = vmatprep.subr.mxu0 %v3345_v50  ;;  %v2932_v21 = vpop.eup %2931  ;;  %v359_v11 = vmul.f32 %v316_v15, %v3540_v13  ;;  %v707_v15 = vand.u32 4294901760, %v706_v57 }
  0x7e   : > { %2616 = vmatpush3.msra.mxu1 %v3303_v53  ;;  %1091 = vmatprep.mubr.f32.mxu1 %v3764_v28  ;;  %v314_v24 = vmul.f32 0.6931472, %v2932_v21 }
  0x7f   : > { %v2934_v19 = vpop.eup %2933  ;;  %678 = vmatmul.mubr.f32.gmra.mxu0 %v677_v26  ;;  %2617 = vmatprep.subr.mxu1 %v3323_v33  ;;  %v412_v21 = vmul.f32 1.442695, %v359_v11 }
  0x80   : > { %v2936_v47 = vpop.eup %2935  ;;  %687 = vmatprep.mubr.f32.mxu0 %v686_v10  ;;  %2538 = vmatpush3.msra.mxu0 %v3352_v40  ;;  %v320_v30 = vmul.f32 0.6931472, %v2934_v19  ;;  %v358_v26 = vmul.f32 %v314_v24, %v3540_v13 }
  0x81   : > { %v2938_v20 = vpop.eup %2937  ;;  %1093 = vmatmul.mubr.f32.gmra.mxu1 %v3781_v61  ;;  %2539 = vmatprep.subr.mxu0 %v3355_v36  ;;  %v318_v63 = vmul.f32 0.6931472, %v2936_v47  ;;  %2953 = vpow2.f32 %v412_v21  ;;  %v4835_v47 = vld [vmem:[#allocation23_spill] sm:$0xff] }
  0x82   : > { %v2940_v2 = vpop.eup %2939  ;;  %2618 = vmatpush3.msra.mxu1 %v3332_v49  ;;  %2540 = vmatpush3.msra.mxu0 %v4833_v14  ;;  %v361_v10 = vmul.f32 %v320_v30, %v3540_v13  ;;  %v324_v39 = vmul.f32 0.6931472, %v2938_v20  ;;  %v410_v19 = vmul.f32 1.442695, %v358_v26 }
  0x83   : > { %v2942_v23 = vpop.eup %2941  ;;  %693 = vmatmul.mubr.f32.gmra.mxu0 %v692_v55  ;;  %2619 = vmatprep.subr.mxu1 %v4834_v0  ;;  %v360_v61 = vmul.f32 %v318_v63, %v3540_v13  ;;  %v322_v28 = vmul.f32 0.6931472, %v2940_v2  ;;  %v4836_v55 = vld [vmem:[#allocation24_spill] sm:$0xff]  ;;  %v4838_v2 = vld [vmem:[#allocation26_spill] sm:$0xff] }
  0x84   : > { %v2944_v24 = vpop.eup %2943  ;;  %702 = vmatprep.mubr.f32.mxu0 %v701_v42  ;;  %2620 = vmatpush3.msra.mxu1 %v4835_v47  ;;  %v416_v11 = vmul.f32 1.442695, %v361_v10  ;;  %v363_v46 = vmul.f32 %v324_v39, %v3540_v13  ;;  %v328_v38 = vmul.f32 0.6931472, %v2942_v23  ;;  %2955 = vpow2.f32 %v410_v19  ;;  %v4837_v42 = vld [vmem:[#allocation29_spill] sm:$0xff]  ;;  %v4839_v19 = vld [vmem:[#allocation31_spill] sm:$0xff] }
  0x85   : > { %v2946_v30 = vpop.eup %2945  ;;  %2541 = vmatprep.subr.mxu0 %v3392_v27  ;;  %v414_v20 = vmul.f32 1.442695, %v360_v61  ;;  %2621 = vmatprep.subr.mxu1 %v4836_v55  ;;  %v362_v57 = vmul.f32 %v322_v28, %v3540_v13  ;;  %v326_v26 = vmul.f32 0.6931472, %v2944_v24 }
  0x86   : > { %v2948_v63 = vpop.eup %2947  ;;  %2957 = vpow2.f32 %v416_v11  ;;  %2542 = vmatpush3.msra.mxu0 %v4837_v42  ;;  %2622 = vmatpush3.msra.mxu1 %v4838_v2  ;;  %v420_v21 = vmul.f32 1.442695, %v363_v46  ;;  %v365_v10 = vmul.f32 %v328_v38, %v3540_v13  ;;  %v332_v23 = vmul.f32 0.6931472, %v2946_v30  ;;  %v4840_v11 = vld [vmem:[#allocation33_spill] sm:$0xff]  ;;  %v4842_v30 = vld [vmem:[#allocation30_spill] sm:$0xff] }
  0x87   : > { %v2950_v39 = vpop.eup %2949  ;;  %708 = vmatmul.mubr.f32.gmra.mxu0 %v707_v15  ;;  %2959 = vpow2.f32 %v414_v20  ;;  %2543 = vmatprep.subr.mxu0 %v4839_v19  ;;  %v418_v61 = vmul.f32 1.442695, %v362_v57  ;;  %v364_v29 = vmul.f32 %v326_v26, %v3540_v13  ;;  %v330_v28 = vmul.f32 0.6931472, %v2948_v63  ;;  %v4843_v15 = vld [vmem:[#allocation37_spill] sm:$0xff]  ;;  %v4844_v63 = vld [vmem:[#allocation38_spill] sm:$0xff] }
  0x88   : > { %v2952_v24 = vpop.eup %2951  ;;  %2961 = vpow2.f32 %v420_v21  ;;  %2544 = vmatpush3.msra.mxu0 %v4840_v11  ;;  %2623 = vmatprep.subr.mxu1 %v4841_v3  ;;  %v424_v51 = vmul.f32 1.442695, %v365_v10  ;;  %v367_v46 = vmul.f32 %v332_v23, %v3540_v13  ;;  %v336_v38 = vmul.f32 0.6931472, %v2950_v39  ;;  %v4845_v21 = vld [vmem:[#allocation32_spill] sm:$0xff]  ;;  %v4846_v23 = vld [vmem:[#allocation34_spill] sm:$0xff] }
  0x89   : > { %2963 = vpow2.f32 %v418_v61  ;;  %2624 = vmatpush3.msra.mxu1 %v4842_v30  ;;  %2545 = vmatprep.subr.mxu0 %v4843_v15  ;;  %v422_v20 = vmul.f32 1.442695, %v364_v29  ;;  %v366_v57 = vmul.f32 %v330_v28, %v3540_v13  ;;  %v334_v26 = vmul.f32 0.6931472, %v2952_v24  ;;  %v4847_v39 = vld [vmem:[#allocation39_spill] sm:$0xff]  ;;  %v4848_v29 = vld [vmem:[#allocation41_spill] sm:$0xff] }
  0x8a   : > { %2965 = vpow2.f32 %v424_v51  ;;  %2546 = vmatpush3.msra.mxu0 %v4844_v63  ;;  %2625 = vmatprep.subr.mxu1 %v4845_v21  ;;  %v428_v62 = vmul.f32 1.442695, %v367_v46  ;;  %v369_v10 = vmul.f32 %v336_v38, %v3540_v13  ;;  %v4849_v28 = vld [vmem:[#allocation35_spill] sm:$0xff]  ;;  %v4850_v24 = vld [vmem:[#allocation36_spill] sm:$0xff] }
  0x8b   : > { %2967 = vpow2.f32 %v422_v20  ;;  %2626 = vmatpush3.msra.mxu1 %v4846_v23  ;;  %2547 = vmatprep.subr.mxu0 %v4847_v39  ;;  %v426_v61 = vmul.f32 1.442695, %v366_v57  ;;  %v368_v5 = vmul.f32 %v334_v26, %v3540_v13  ;;  %v4851_v38 = vld [vmem:[#allocation44_spill] sm:$0xff]  ;;  %v4853_v57 = vld [vmem:[#allocation42_spill] sm:$0xff]  ;;  %v4856_v13 = vld [vmem:[#allocation3_spill] sm:$0xff] }
  0x8c   : > { %2969 = vpow2.f32 %v428_v62  ;;  %2548 = vmatpush3.msra.mxu0 %v4848_v29  ;;  %2627 = vmatprep.subr.mxu1 %v4849_v28  ;;  %v432_v51 = vmul.f32 1.442695, %v369_v10  ;;  %v4852_v20 = vld [vmem:[#allocation40_spill] sm:$0xff] }
  0x8d   : > { %2971 = vpow2.f32 %v426_v61  ;;  %2628 = vmatpush3.msra.mxu1 %v4850_v24  ;;  %2549 = vmatprep.subr.mxu0 %v3497_v18  ;;  %v430_v46 = vmul.f32 1.442695, %v368_v5  ;;  %v4854_v62 = vld [vmem:[#allocation8_spill] sm:$0xff] }
  0x8e   : > { %2973 = vpow2.f32 %v432_v51  ;;  %2550 = vmatpush3.msra.mxu0 %v4851_v38  ;;  %2629 = vmatprep.subr.mxu1 %v4852_v20  ;;  %v4855_v26 = vand.u32 4294901760, %v4854_v62  ;;  %v2954_v10 = vpop.eup %2953 }
  0x8f   : > { %2975 = vpow2.f32 %v430_v46  ;;  %2630 = vmatpush3.msra.mxu1 %v4853_v57  ;;  %v3875_v28 = vand.u32 4294901760, %v2954_v10 }
  0x90   : > { %2679 = vmatprep.subr.mxu0 %v4855_v26  ;;  %2759 = vmatprep.subr.mxu1 %v4856_v13 }
  0x91   : > { %v2956_v61 = vpop.eup %2955  ;;  %4857 = vst [vmem:[#allocation25_spill] sm:$0xff] %v3875_v28  ;;  %v3880_v51 = vsub.f32 %v2954_v10, %v3875_v28  ;;  %1098 = vmatprep.mubr.f32.mxu1 %v3875_v28 }
  0x92   : > { %v3877_v18 = vand.u32 4294901760, %v2956_v61 }
  0x93   : > { %v2958_v24 = vpop.eup %2957  ;;  %v4724_v20 = vand.u32 4294901760, %v3880_v51 }
  0x94   : > { %4858 = vst [vmem:[#allocation22_spill] sm:$0xff] %v3877_v18  ;;  %v2960_v5 = vpop.eup %2959  ;;  %v3883_v46 = vand.u32 4294901760, %v2958_v24  ;;  %v3886_v62 = vsub.f32 %v2956_v61, %v3877_v18  ;;  %1100 = vmatmul.mubr.f32.gmra.mxu1 %v3877_v18 }
  0x95   : > { %v2962_v57 = vpop.eup %2961  ;;  %v3889_v13 = vand.u32 4294901760, %v2960_v5  ;;  %v715_v23 = vsub.f32 %v3880_v51, %v4724_v20 }
  0x96   : > { %4859 = vst [vmem:[#allocation23_spill] sm:$0xff] %v3883_v46  ;;  %v2964_v26 = vpop.eup %2963  ;;  %v3893_v38 = vsub.f32 %v2958_v24, %v3883_v46  ;;  %1105 = vmatprep.mubr.f32.mxu1 %v3883_v46  ;;  %v3896_v10 = vand.u32 4294901760, %v2962_v57  ;;  %v4725_v29 = vand.u32 4294901760, %v3886_v62 }
  0x97   : > { %4860 = vst [vmem:[#allocation8_spill] sm:$0xff] %v3889_v13  ;;  %v2966_v28 = vpop.eup %2965  ;;  %v3900_v61 = vsub.f32 %v2960_v5, %v3889_v13  ;;  %v3902_v39 = vand.u32 4294901760, %v2964_v26  ;;  %v716_v3 = vand.u32 4294901760, %v715_v23 }
  0x98   : > { %4861 = vst [vmem:[#allocation3_spill] sm:$0xff] %v3896_v10  ;;  %v2968_v18 = vpop.eup %2967  ;;  %v3909_v21 = vsub.f32 %v2962_v57, %v3896_v10  ;;  %v3911_v46 = vand.u32 4294901760, %v2966_v28  ;;  %v721_v5 = vsub.f32 %v3886_v62, %v4725_v29  ;;  %1107 = vmatmul.mubr.f32.gmra.mxu1 %v3889_v13  ;;  %v4864_v57 = vand.u32 4294901760, %v3893_v38 }
  0x99   : > { %4862 = vst [vmem:[#allocation75_spill] sm:$0xff] %v3902_v39  ;;  %v2970_v63 = vpop.eup %2969  ;;  %v3919_v30 = vsub.f32 %v2964_v26, %v3902_v39  ;;  %v3921_v20 = vand.u32 4294901760, %v2968_v18  ;;  %1112 = vmatprep.mubr.f32.mxu1 %v3896_v10  ;;  %v4866_v26 = vand.u32 4294901760, %v3900_v61  ;;  %717 = vmatprep.mubr.f32.mxu0 %v716_v3 }
  0x9a   : > { %4863 = vst [vmem:[#allocation76_spill] sm:$0xff] %v3911_v46  ;;  %v2972_v24 = vpop.eup %2971  ;;  %v730_v11 = vsub.f32 %v3893_v38, %v4864_v57  ;;  %v4731_v19 = vand.u32 4294901760, %v3909_v21  ;;  %v3929_v29 = vsub.f32 %v2966_v28, %v3911_v46  ;;  %v722_v13 = vand.u32 4294901760, %v721_v5 }
  0x9b   : > { %v2974_v15 = vpop.eup %2973  ;;  %v736_v2 = vsub.f32 %v3900_v61, %v4866_v26  ;;  %v4732_v55 = vand.u32 4294901760, %v3919_v30  ;;  %v3936_v23 = vsub.f32 %v2968_v18, %v3921_v20  ;;  %v3942_v27 = vand.u32 4294901760, %v2970_v63 }
  0x9c   : > { %4865 = vst [vmem:[#allocation77_spill] sm:$0xff] %v3929_v29  ;;  %v2976_v42 = vpop.eup %2975  ;;  %v731_v57 = vand.u32 4294901760, %v730_v11  ;;  %v745_v10 = vsub.f32 %v3909_v21, %v4731_v19  ;;  %v4735_v28 = vand.u32 4294901760, %v3929_v29  ;;  %723 = vmatmul.mubr.f32.gmra.mxu0 %v722_v13  ;;  %1114 = vmatmul.mubr.f32.gmra.mxu1 %v3902_v39  ;;  %v3949_v3 = vand.u32 4294901760, %v2972_v24 }
  0x9d   : > { %v737_v5 = vand.u32 4294901760, %v736_v2  ;;  %v751_v26 = vsub.f32 %v3919_v30, %v4732_v55  ;;  %1119 = vmatprep.mubr.f32.mxu1 %v3911_v46  ;;  %v3956_v2 = vsub.f32 %v2970_v63, %v3942_v27  ;;  %v3958_v13 = vand.u32 4294901760, %v2974_v15 }
  0x9e   : > { %732 = vmatprep.mubr.f32.mxu0 %v731_v57  ;;  %v746_v11 = vand.u32 4294901760, %v745_v10  ;;  %v760_v19 = vsub.f32 %v3929_v29, %v4735_v28  ;;  %v3961_v55 = vsub.f32 %v2972_v24, %v3949_v3  ;;  %v3963_v39 = vand.u32 4294901760, %v2976_v42 }
  0x9f   : > { %v4740_v18 = vand.u32 4294901760, %v3956_v2  ;;  %v3967_v10 = vsub.f32 %v2974_v15, %v3958_v13  ;;  %v752_v57 = vand.u32 4294901760, %v751_v26  ;;  %v4867_v28 = vand.u32 4294901760, %v3936_v23 }
  0xa0   : > { %738 = vmatmul.mubr.f32.gmra.mxu0 %v737_v5  ;;  %1121 = vmatmul.mubr.f32.gmra.mxu1 %v3921_v20  ;;  %v4741_v63 = vand.u32 4294901760, %v3961_v55  ;;  %v3975_v24 = vsub.f32 %v2976_v42, %v3963_v39  ;;  %v761_v29 = vand.u32 4294901760, %v760_v19 }
  0xa1   : > { %v766_v46 = vsub.f32 %v3936_v23, %v4867_v28  ;;  %747 = vmatprep.mubr.f32.mxu0 %v746_v11  ;;  %v775_v15 = vsub.f32 %v3956_v2, %v4740_v18  ;;  %1126 = vmatprep.mubr.f32.mxu1 %v3942_v27  ;;  %v4742_v5 = vand.u32 4294901760, %v3967_v10 }
  0xa2   : > { %v781_v28 = vsub.f32 %v3961_v55, %v4741_v63  ;;  %v4743_v42 = vand.u32 4294901760, %v3975_v24  ;;  %v4868_v63 = vand.u32 4294901760, %v3565_v12 }
  0xa3   : > { %v767_v26 = vand.u32 4294901760, %v766_v46  ;;  %v776_v19 = vand.u32 4294901760, %v775_v15  ;;  %v790_v11 = vsub.f32 %v3967_v10, %v4742_v5  ;;  %v4869_v15 = vand.u32 4294901760, %v3575_v41  ;;  %v4872_v5 = vld [vmem:[#allocation4_spill] sm:$0xff] }
  0xa4   : > { %753 = vmatmul.mubr.f32.gmra.mxu0 %v752_v57  ;;  %1128 = vmatmul.mubr.f32.gmra.mxu1 %v3949_v3  ;;  %v782_v18 = vand.u32 4294901760, %v781_v28  ;;  %v796_v46 = vsub.f32 %v3975_v24, %v4743_v42  ;;  %v4873_v42 = vld [vmem:[#allocation5_spill] sm:$0xff] }
  0xa5   : > { %762 = vmatprep.mubr.f32.mxu0 %v761_v29  ;;  %1133 = vmatprep.mubr.f32.mxu1 %v3958_v13  ;;  %v791_v57 = vand.u32 4294901760, %v790_v11 }
  0xa6   : > { %v797_v29 = vand.u32 4294901760, %v796_v46  ;;  %v4878_v46 = vld [vmem:[#allocation6_spill] sm:$0xff] }
  0xa8   : > { %768 = vmatmul.mubr.f32.gmra.mxu0 %v767_v26  ;;  %1135 = vmatmul.mubr.f32.gmra.mxu1 %v3963_v39  ;;  %v4870_v26 = vld [vmem:[#allocation50_spill] sm:$0xff] }
  0xa9   : > { %777 = vmatprep.mubr.f32.mxu0 %v776_v19  ;;  %1512 = vmatprep.mubr.f32.mxu1 %v4868_v63  ;;  %v4871_v28 = vand.u32 4294901760, %v4870_v26  ;;  %v4874_v19 = vld [vmem:[#allocation52_spill] sm:$0xff] }
  0xaa   : > { %v4875_v11 = vand.u32 4294901760, %v4874_v19 }
  0xac   : > { %783 = vmatmul.mubr.f32.gmra.mxu0 %v782_v18  ;;  %1516 = vmatmul.mubr.f32.vlgmr.msra.gmra.mxu1 %v4869_v15  ;;  %v4876_v18 = vld [vmem:[#allocation54_spill] sm:$0xff] }
  0xad   : > { %792 = vmatprep.mubr.f32.mxu0 %v791_v57  ;;  %2760 = vmatpush3.msra.mxu1 %v3098_v4  ;;  %v4877_v63 = vand.u32 4294901760, %v4876_v18  ;;  %v4879_v57 = vld [vmem:[#allocation7_spill] sm:$0xff]  ;;  %v4880_v4 = vld [vmem:[#allocation56_spill] sm:$0xff] }
  0xae   : > { %1523 = vmatprep.mubr.f32.mxu1 %v4871_v28  ;;  %2761 = vmatprep.subr.mxu1 %v4872_v5  ;;  %v4881_v15 = vand.u32 4294901760, %v4880_v4  ;;  %v4882_v5 = vld [vmem:[#allocation9_spill] sm:$0xff] }
  0xaf   : > { %2762 = vmatpush3.msra.mxu1 %v4873_v42  ;;  %v4883_v42 = vand.u32 4294901760, %v4882_v5  ;;  %v4893_v5 = vld [vmem:[#allocation14_spill] sm:$0xff] }
  0xb0   : > { %798 = vmatmul.mubr.f32.gmra.mxu0 %v797_v29  ;;  %1527 = vmatmul.mubr.f32.gmra.mxu1 %v4875_v11  ;;  %v4884_v29 = vld [vmem:[#allocation10_spill] sm:$0xff] }
  0xb1   : > { %1270 = vmatprep.mubr.f32.mxu0 %v3565_v12  ;;  %1534 = vmatprep.mubr.f32.mxu1 %v4877_v63  ;;  %v4885_v28 = vand.u32 4294901760, %v4884_v29  ;;  %v4886_v12 = vld [vmem:[#allocation57_spill] sm:$0xff]  ;;  %v4888_v63 = vld [vmem:[#allocation12_spill] sm:$0xff] }
  0xb2   : > { %2763 = vmatprep.subr.mxu1 %v4878_v46  ;;  %v4887_v11 = vand.u32 4294901760, %v4886_v12  ;;  %v4889_v46 = vand.u32 4294901760, %v4888_v63  ;;  %v4899_v63 = vld [vmem:[#allocation18_spill] sm:$0xff] }
  0xb3   : > { %2764 = vmatpush3.msra.mxu1 %v4879_v57  ;;  %v4890_v57 = vld [vmem:[#allocation11_spill] sm:$0xff] }
  0xb4   : > { %1273 = vmatmul.mubr.f32.vlgmr.msra.gmra.mxu0 %v3575_v41  ;;  %1538 = vmatmul.mubr.f32.gmra.mxu1 %v4881_v15  ;;  %v4891_v41 = vld [vmem:[#allocation13_spill] sm:$0xff] }
  0xb5   : > { %2680 = vmatpush3.msra.mxu0 %v4883_v42  ;;  %1279 = vmatprep.mubr.f32.mxu0 %v4870_v26  ;;  %v4892_v15 = vand.u32 4294901760, %v4891_v41  ;;  %v4894_v26 = vand.u32 4294901760, %v4893_v5  ;;  %v4895_v42 = vld [vmem:[#allocation16_spill] sm:$0xff] }
  0xb6   : > { %2681 = vmatprep.subr.mxu0 %v4885_v28  ;;  %1545 = vmatprep.mubr.f32.mxu1 %v4887_v11  ;;  %v4896_v29 = vand.u32 4294901760, %v4895_v42  ;;  %v4897_v28 = vld [vmem:[#allocation60_spill] sm:$0xff] }
  0xb7   : > { %2682 = vmatpush3.msra.mxu0 %v4889_v46  ;;  %2765 = vmatprep.subr.mxu1 %v4890_v57  ;;  %v4898_v11 = vand.u32 4294901760, %v4897_v28  ;;  %v4900_v46 = vand.u32 4294901760, %v4899_v63  ;;  %v4901_v57 = vld [vmem:[#allocation15_spill] sm:$0xff]  ;;  %v4906_v5 = vld [vmem:[#allocation64_spill] sm:$0xff]  ;;  %v4911_v63 = vld [vmem:[#allocation66_spill] sm:$0xff] }
  0xb8   : > { %1282 = vmatmul.mubr.f32.gmra.mxu0 %v4874_v19  ;;  %2683 = vmatprep.subr.mxu0 %v4892_v15  ;;  %v4902_v19 = vld [vmem:[#allocation61_spill] sm:$0xff]  ;;  %v4908_v42 = vld [vmem:[#allocation20_spill] sm:$0xff] }
  0xb9   : > { %1288 = vmatprep.mubr.f32.mxu0 %v4876_v18  ;;  %2684 = vmatpush3.msra.mxu0 %v4894_v26  ;;  %v4903_v41 = vand.u32 4294901760, %v4902_v19  ;;  %v4904_v18 = vld [vmem:[#allocation19_spill] sm:$0xff]  ;;  %v4907_v26 = vand.u32 4294901760, %v4906_v5 }
  0xba   : > { %2685 = vmatprep.subr.mxu0 %v4896_v29  ;;  %1549 = vmatmul.mubr.f32.gmra.mxu1 %v4898_v11  ;;  %v4905_v15 = vand.u32 4294901760, %v4904_v18  ;;  %v4909_v29 = vand.u32 4294901760, %v4908_v42  ;;  %v4910_v11 = vld [vmem:[#allocation17_spill] sm:$0xff]  ;;  %v4917_v18 = vand.u32 4294901760, %v3693_v17 }
  0xbb   : > { %2686 = vmatpush3.msra.mxu0 %v4900_v46  ;;  %2766 = vmatpush3.msra.mxu1 %v4901_v57  ;;  %v4912_v46 = vand.u32 4294901760, %v4911_v63  ;;  %v4915_v57 = vand.u32 4294901760, %v3680_v9 }
  0xbc   : > { %1291 = vmatmul.mubr.f32.gmra.mxu0 %v4880_v4  ;;  %1556 = vmatprep.mubr.f32.mxu1 %v4903_v41  ;;  %v4913_v4 = vld [vmem:[#allocation21_spill] sm:$0xff]  ;;  %v4916_v41 = vand.u32 4294901760, %v3243_v6  ;;  %v4920_v6 = vand.u32 4294901760, %v3249_v8  ;;  %v4924_v8 = vand.u32 4294901760, %v3301_v52  ;;  %v4928_v52 = vand.u32 4294901760, %v3326_v44 }
  0xbd   : > { %1297 = vmatprep.mubr.f32.mxu0 %v4886_v12  ;;  %2687 = vmatprep.subr.mxu0 %v4905_v15  ;;  %v4914_v12 = vand.u32 4294901760, %v4913_v4  ;;  %v4932_v44 = vand.u32 4294901760, %v3352_v40  ;;  %v4936_v40 = vand.u32 4294901760, %v4833_v14  ;;  %v4966_v4 = vld [vmem:[#allocation41_spill] sm:$0xff] }
  0xbe   : > { %1560 = vmatmul.mubr.f32.gmra.mxu1 %v4907_v26  ;;  %2688 = vmatpush3.msra.mxu0 %v4909_v29  ;;  %v4958_v26 = vld [vmem:[#allocation38_spill] sm:$0xff]  ;;  %v4960_v29 = vld [vmem:[#allocation32_spill] sm:$0xff] }
  0xbf   : > { %2767 = vmatprep.subr.mxu1 %v4910_v11  ;;  %1567 = vmatprep.mubr.f32.mxu1 %v4912_v46  ;;  %v4959_v42 = vand.u32 4294901760, %v4958_v26  ;;  %v4961_v11 = vand.u32 4294901760, %v3956_v2  ;;  %v4965_v46 = vand.u32 4294901760, %v3961_v55 }
  0xc0   : > { %1300 = vmatmul.mubr.f32.gmra.mxu0 %v4897_v28  ;;  %2768 = vmatpush3.msra.mxu1 %v3212_v54  ;;  %v4918_v54 = vand.u32 4294901760, %v3246_v7  ;;  %v4919_v28 = vand.u32 4294901760, %v3708_v25  ;;  %v4923_v7 = vand.u32 4294901760, %v3752_v48 }
  0xc1   : > { %1306 = vmatprep.mubr.f32.mxu0 %v4902_v19  ;;  %2689 = vmatprep.subr.mxu0 %v4914_v12  ;;  %v4967_v12 = vand.u32 4294901760, %v4966_v4 }
  0xc2   : > { %1571 = vmatmul.mubr.f32.gmra.mxu1 %v4915_v57  ;;  %2690 = vmatpush3.msra.mxu0 %v4916_v41  ;;  %v4968_v57 = vld [vmem:[#allocation35_spill] sm:$0xff]  ;;  %v4969_v41 = vand.u32 4294901760, %v3967_v10 }
  0xc3   : > { %2769 = vmatprep.subr.mxu1 %v3217_v56  ;;  %1578 = vmatprep.mubr.f32.mxu1 %v4917_v18  ;;  %v4921_v56 = vand.u32 4294901760, %v3729_v16  ;;  %v4971_v18 = vld [vmem:[#allocation43_spill] sm:$0xff] }
  0xc4   : > { %1309 = vmatmul.mubr.f32.gmra.mxu0 %v4906_v5  ;;  %2770 = vmatpush3.msra.mxu1 %v3222_v58  ;;  %v4922_v58 = vand.u32 4294901760, %v3267_v37  ;;  %v4927_v37 = vand.u32 4294901760, %v3778_v22  ;;  %v4957_v5 = vand.u32 4294901760, %v3936_v23 }
  0xc5   : > { %1315 = vmatprep.mubr.f32.mxu0 %v4911_v63  ;;  %2691 = vmatprep.subr.mxu0 %v4918_v54  ;;  %v4972_v54 = vand.u32 4294901760, %v4971_v18 }
  0xc6   : > { %1582 = vmatmul.mubr.f32.gmra.mxu1 %v4919_v28  ;;  %2692 = vmatpush3.msra.mxu0 %v4920_v6  ;;  %v4973_v28 = vand.u32 4294901760, %v3975_v24  ;;  %v4974_v6 = vld [vmem:[#allocation44_spill] sm:$0xff] }
  0xc7   : > { %2771 = vmatprep.subr.mxu1 %v3224_v59  ;;  %1589 = vmatprep.mubr.f32.mxu1 %v4921_v56  ;;  %v4925_v59 = vand.u32 4294901760, %v3761_v31  ;;  %v4975_v56 = vand.u32 4294901760, %v4974_v6 }
  0xc8   : > { %1318 = vmatmul.mubr.f32.gmra.mxu0 %v3680_v9  ;;  %2772 = vmatpush3.msra.mxu1 %v3226_v60  ;;  %v4926_v60 = vand.u32 4294901760, %v3321_v35  ;;  %v4931_v35 = vand.u32 4294901760, %v3805_v34  ;;  %v4943_v9 = vld [vmem:[#allocation24_spill] sm:$0xff] }
  0xc9   : > { %1324 = vmatprep.mubr.f32.mxu0 %v3693_v17  ;;  %2693 = vmatprep.subr.mxu0 %v4922_v58  ;;  %v4976_v58 = vld [vmem:[#allocation40_spill] sm:$0xff] }
  0xca   : > { %1593 = vmatmul.mubr.f32.gmra.mxu1 %v4923_v7  ;;  %2694 = vmatpush3.msra.mxu0 %v4924_v8  ;;  %v4977_v7 = vld [vmem:[#allocation46_spill] sm:$0xff]  ;;  %v4980_v8 = vld [vmem:[#allocation48_spill] sm:$0xff] }
  0xcb   : > { %2773 = vmatprep.subr.mxu1 %v3239_v1  ;;  %1600 = vmatprep.mubr.f32.mxu1 %v4925_v59  ;;  %v4929_v1 = vand.u32 4294901760, %v3792_v45  ;;  %v4981_v59 = vld [vmem:[#allocation49_spill] sm:$0xff] }
  0xcc   : > { %1327 = vmatmul.mubr.f32.gmra.mxu0 %v3708_v25  ;;  %2774 = vmatpush3.msra.mxu1 %v3260_v32  ;;  %v4930_v32 = vand.u32 4294901760, %v3345_v50  ;;  %v4935_v50 = vand.u32 4294901760, %v3886_v62  ;;  %v4944_v25 = vand.u32 4294901760, %v3909_v21 }
  0xcd   : > { %1333 = vmatprep.mubr.f32.mxu0 %v3729_v16  ;;  %2695 = vmatprep.subr.mxu0 %v4926_v60  ;;  %v4945_v16 = vld [vmem:[#allocation26_spill] sm:$0xff]  ;;  %v4982_v60 = vld [vmem:[#allocation51_spill] sm:$0xff] }
  0xce   : > { %1604 = vmatmul.mubr.f32.gmra.mxu1 %v4927_v37  ;;  %2696 = vmatpush3.msra.mxu0 %v4928_v52  ;;  %v4984_v37 = vld [vmem:[#allocation55_spill] sm:$0xff]  ;;  %v4987_v52 = vld [vmem:[#allocation62_spill] sm:$0xff] }
  0xcf   : > { %2775 = vmatprep.subr.mxu1 %v3279_v43  ;;  %1611 = vmatprep.mubr.f32.mxu1 %v4929_v1  ;;  %v4933_v43 = vand.u32 4294901760, %v3880_v51  ;;  %v4988_v1 = vld [vmem:[#allocation63_spill] sm:$0xff] }
  0xd0   : > { %1336 = vmatmul.mubr.f32.gmra.mxu0 %v3752_v48  ;;  %2776 = vmatpush3.msra.mxu1 %v3303_v53  ;;  %v4934_v53 = vand.u32 4294901760, %v3355_v36  ;;  %v4940_v48 = vand.u32 4294901760, %v3900_v61 }
  0xd1   : > { %1342 = vmatprep.mubr.f32.mxu0 %v3761_v31  ;;  %2697 = vmatprep.subr.mxu0 %v4930_v32  ;;  %v4946_v31 = vld [vmem:[#allocation31_spill] sm:$0xff]  ;;  %v4989_v32 = vld [vmem:[#allocation65_spill] sm:$0xff] }
  0xd2   : > { %1615 = vmatmul.mubr.f32.gmra.mxu1 %v4931_v35  ;;  %2698 = vmatpush3.msra.mxu0 %v4932_v44  ;;  %v4990_v35 = vld [vmem:[#allocation67_spill] sm:$0xff]  ;;  %v4991_v44 = vld [vmem:[#allocation68_spill] sm:$0xff] }
  0xd3   : > { %2777 = vmatprep.subr.mxu1 %v3323_v33  ;;  %1622 = vmatprep.mubr.f32.mxu1 %v4933_v43  ;;  %v4937_v33 = vand.u32 4294901760, %v3893_v38  ;;  %v4992_v43 = vld [vmem:[#allocation69_spill] sm:$0xff] }
  0xd4   : > { %1345 = vmatmul.mubr.f32.gmra.mxu0 %v3778_v22  ;;  %2778 = vmatpush3.msra.mxu1 %v3332_v49  ;;  %v4938_v49 = vld [vmem:[#allocation27_spill] sm:$0xff]  ;;  %v4948_v22 = vand.u32 4294901760, %v3919_v30 }
  0xd5   : > { %1351 = vmatprep.mubr.f32.mxu0 %v3792_v45  ;;  %2699 = vmatprep.subr.mxu0 %v4934_v53  ;;  %v4939_v36 = vand.u32 4294901760, %v4938_v49  ;;  %v4941_v45 = vld [vmem:[#allocation29_spill] sm:$0xff]  ;;  %v4993_v53 = vld [vmem:[#allocation70_spill] sm:$0xff] }
  0xd6   : > { %1626 = vmatmul.mubr.f32.gmra.mxu1 %v4935_v50  ;;  %2700 = vmatpush3.msra.mxu0 %v4936_v40  ;;  %v4942_v17 = vand.u32 4294901760, %v4941_v45  ;;  %v4994_v50 = vld [vmem:[#allocation71_spill] sm:$0xff]  ;;  %v4995_v40 = vld [vmem:[#allocation72_spill] sm:$0xff]  ;;  %v4997_v49 = vld [vmem:[#allocation73_spill] sm:$0xff] }
  0xd7   : > { %2779 = vmatprep.subr.mxu1 %v4834_v0  ;;  %1633 = vmatprep.mubr.f32.mxu1 %v4937_v33  ;;  %v4947_v0 = vand.u32 4294901760, %v4946_v31  ;;  %v4996_v33 = vld [vmem:[#allocation45_spill] sm:$0xff]  ;;  %v5000_v45 = vld [vmem:[#allocation22_spill] sm:$0xff]  ;;  %v5003_v31 = vld [vmem:[#allocation3_spill] sm:$0xff] }
  0xd8   : > { %1354 = vmatmul.mubr.f32.gmra.mxu0 %v3805_v34  ;;  %2780 = vmatpush3.msra.mxu1 %v4835_v47  ;;  %v4949_v34 = vld [vmem:[#allocation33_spill] sm:$0xff]  ;;  %v4951_v47 = vld [vmem:[#allocation28_spill] sm:$0xff]  ;;  %2977 = vrcp.f32 %v4996_v33 }
  0xd9   : > { %1360 = vmatprep.mubr.f32.mxu0 %v3880_v51  ;;  %2701 = vmatprep.subr.mxu0 %v4939_v36  ;;  %v4950_v14 = vand.u32 4294901760, %v4949_v34  ;;  %v4952_v51 = vld [vmem:[#allocation77_spill] sm:$0xff]  ;;  %v4998_v36 = vld [vmem:[#allocation74_spill] sm:$0xff]  ;;  %v5004_v34 = vld [vmem:[#allocation75_spill] sm:$0xff] }
  0xda   : > { %1637 = vmatmul.mubr.f32.gmra.mxu1 %v4940_v48  ;;  %2702 = vmatpush3.msra.mxu0 %v4942_v17  ;;  %v4953_v19 = vand.u32 4294901760, %v4952_v51  ;;  %v4999_v48 = vld [vmem:[#allocation25_spill] sm:$0xff]  ;;  %v5001_v17 = vld [vmem:[#allocation23_spill] sm:$0xff] }
  0xdb   : > { %2781 = vmatprep.subr.mxu1 %v4943_v9  ;;  %1644 = vmatprep.mubr.f32.mxu1 %v4944_v25  ;;  %v5002_v9 = vld [vmem:[#allocation8_spill] sm:$0xff] }
  0xdc   : > { %1363 = vmatmul.mubr.f32.gmra.mxu0 %v3886_v62  ;;  %2782 = vmatpush3.msra.mxu1 %v4945_v16  ;;  %v4954_v62 = vld [vmem:[#allocation30_spill] sm:$0xff] }
  0xdd   : > { %1369 = vmatprep.mubr.f32.mxu0 %v3893_v38  ;;  %2703 = vmatprep.subr.mxu0 %v4947_v0  ;;  %v4955_v38 = vld [vmem:[#allocation37_spill] sm:$0xff] }
  0xde   : > { %1648 = vmatmul.mubr.f32.gmra.mxu1 %v4948_v22  ;;  %2704 = vmatpush3.msra.mxu0 %v4950_v14  ;;  %v4956_v15 = vand.u32 4294901760, %v4955_v38 }
  0xdf   : > { %2783 = vmatprep.subr.mxu1 %v4951_v47  ;;  %1655 = vmatprep.mubr.f32.mxu1 %v4953_v19  ;;  %v5005_v47 = vld [vmem:[#allocation76_spill] sm:$0xff] }
  0xe0   : > { %1372 = vmatmul.mubr.f32.gmra.mxu0 %v3900_v61  ;;  %2784 = vmatpush3.msra.mxu1 %v4954_v62  ;;  %v4962_v61 = vld [vmem:[#allocation34_spill] sm:$0xff] }
  0xe1   : > { %1378 = vmatprep.mubr.f32.mxu0 %v3909_v21  ;;  %2705 = vmatprep.subr.mxu0 %v4956_v15  ;;  %v4963_v21 = vld [vmem:[#allocation39_spill] sm:$0xff] }
  0xe2   : > { %1659 = vmatmul.mubr.f32.gmra.mxu1 %v4957_v5  ;;  %2706 = vmatpush3.msra.mxu0 %v4959_v42  ;;  %v4964_v63 = vand.u32 4294901760, %v4963_v21 }
  0xe3   : > { %2785 = vmatprep.subr.mxu1 %v4960_v29  ;;  %1666 = vmatprep.mubr.f32.mxu1 %v4961_v11 }
  0xe4   : > { %1381 = vmatmul.mubr.f32.gmra.mxu0 %v3919_v30  ;;  %2786 = vmatpush3.msra.mxu1 %v4962_v61  ;;  %v4970_v30 = vld [vmem:[#allocation36_spill] sm:$0xff] }
  0xe5   : > { %1387 = vmatprep.mubr.f32.mxu0 %v4952_v51  ;;  %2707 = vmatprep.subr.mxu0 %v4964_v63  ;;  %v2978_v16 = vpop.eup %2977 }
  0xe6   : > { %1670 = vmatmul.mubr.f32.gmra.mxu1 %v4965_v46  ;;  %2708 = vmatpush3.msra.mxu0 %v4967_v12  ;;  %2839 = vpush %v2978_v16 }
  0xe7   : > { %2787 = vmatprep.subr.mxu1 %v4968_v57  ;;  %1677 = vmatprep.mubr.f32.mxu1 %v4969_v41 }
  0xe8   : > { %1390 = vmatmul.mubr.f32.gmra.mxu0 %v3936_v23  ;;  %2788 = vmatpush3.msra.mxu1 %v4970_v30  ;;  %v4978_v23 = vld [vmem:[#allocation42_spill] sm:$0xff] }
  0xe9   : > { %1396 = vmatprep.mubr.f32.mxu0 %v3956_v2  ;;  %2709 = vmatprep.subr.mxu0 %v4972_v54  ;;  %v4979_v2 = vld [vmem:[#allocation47_spill] sm:$0xff] }
  0xea   : > { %1681 = vmatmul.mubr.f32.gmra.mxu1 %v4973_v28  ;;  %2710 = vmatpush3.msra.mxu0 %v4975_v56 }
  0xeb   : > { %2789 = vmatprep.subr.mxu1 %v4976_v58  ;;  %2056 = vmatprep.mubr.f32.mxu1 %v4977_v7 }
  0xec   : > { %1399 = vmatmul.mubr.f32.gmra.mxu0 %v3961_v55  ;;  %2790 = vmatpush3.msra.mxu1 %v4978_v23  ;;  %v4983_v55 = vld [vmem:[#allocation53_spill] sm:$0xff] }
  0xed   : > { %1405 = vmatprep.mubr.f32.mxu0 %v3967_v10  ;;  %v4985_v10 = vld [vmem:[#allocation58_spill] sm:$0xff] }
  0xee   : > { %2058 = vmatmul.mubr.f32.vlgmr.msra.gmra.mxu1 %v4979_v2 }
  0xef   : > { %2063 = vmatprep.mubr.f32.mxu1 %v4980_v8 }
  0xf0   : > { %1408 = vmatmul.mubr.f32.gmra.mxu0 %v3975_v24  ;;  %v4986_v24 = vld [vmem:[#allocation59_spill] sm:$0xff] }
  0xf1   : > { %1847 = vmatprep.mubr.f32.mxu0 %v4977_v7 }
  0xf2   : > { %2065 = vmatmul.mubr.f32.gmra.mxu1 %v4981_v59 }
  0xf3   : > { %2070 = vmatprep.mubr.f32.mxu1 %v4982_v60 }
  0xf4   : > { %1849 = vmatmul.mubr.f32.vlgmr.msra.gmra.mxu0 %v4979_v2 }
  0xf5   : > { %1854 = vmatprep.mubr.f32.mxu0 %v4980_v8 }
  0xf6   : > { %2072 = vmatmul.mubr.f32.gmra.mxu1 %v4983_v55 }
  0xf7   : > { %2077 = vmatprep.mubr.f32.mxu1 %v4984_v37 }
  0xf8   : > { %1856 = vmatmul.mubr.f32.gmra.mxu0 %v4981_v59 }
  0xf9   : > { %1861 = vmatprep.mubr.f32.mxu0 %v4982_v60 }
  0xfa   : > { %2079 = vmatmul.mubr.f32.gmra.mxu1 %v4985_v10 }
  0xfb   : > { %2084 = vmatprep.mubr.f32.mxu1 %v4986_v24 }
  0xfc   : > { %1863 = vmatmul.mubr.f32.gmra.mxu0 %v4983_v55 }
  0xfd   : > { %1868 = vmatprep.mubr.f32.mxu0 %v4984_v37 }
  0xfe   : > { %2086 = vmatmul.mubr.f32.gmra.mxu1 %v4987_v52 }
  0xff   : > { %2091 = vmatprep.mubr.f32.mxu1 %v4988_v1 }
 0x100   : > { %1870 = vmatmul.mubr.f32.gmra.mxu0 %v4985_v10 }
 0x101   : > { %1875 = vmatprep.mubr.f32.mxu0 %v4986_v24 }
 0x102   : > { %2093 = vmatmul.mubr.f32.gmra.mxu1 %v4989_v32 }
 0x103   : > { %2098 = vmatprep.mubr.f32.mxu1 %v4990_v35 }
 0x104   : > { %1877 = vmatmul.mubr.f32.gmra.mxu0 %v4987_v52 }
 0x105   : > { %1882 = vmatprep.mubr.f32.mxu0 %v4988_v1 }
 0x106   : > { %2100 = vmatmul.mubr.f32.gmra.mxu1 %v4991_v44 }
 0x107   : > { %2105 = vmatprep.mubr.f32.mxu1 %v4992_v43 }
 0x108   : > { %1884 = vmatmul.mubr.f32.gmra.mxu0 %v4989_v32 }
 0x109   : > { %1889 = vmatprep.mubr.f32.mxu0 %v4990_v35 }
 0x10a   : > { %2107 = vmatmul.mubr.f32.gmra.mxu1 %v4993_v53 }
 0x10b   : > { %2112 = vmatprep.mubr.f32.mxu1 %v4994_v50 }
 0x10c   : > { %1891 = vmatmul.mubr.f32.gmra.mxu0 %v4991_v44 }
 0x10d   : > { %1896 = vmatprep.mubr.f32.mxu0 %v4992_v43 }
 0x10e   : > { %2114 = vmatmul.mubr.f32.gmra.mxu1 %v4995_v40 }
 0x10f   : > { %2119 = vmatprep.mubr.f32.mxu1 %v4997_v49 }
 0x110   : > { %1898 = vmatmul.mubr.f32.gmra.mxu0 %v4993_v53 }
 0x111   : > { %1903 = vmatprep.mubr.f32.mxu0 %v4994_v50 }
 0x112   : > { %2121 = vmatmul.mubr.f32.gmra.mxu1 %v4998_v36 }
 0x113   : > { %2126 = vmatprep.mubr.f32.mxu1 %v4999_v48 }
 0x114   : > { %1905 = vmatmul.mubr.f32.gmra.mxu0 %v4995_v40 }
 0x115   : > { %1910 = vmatprep.mubr.f32.mxu0 %v4997_v49 }
 0x116   : > { %2128 = vmatmul.mubr.f32.gmra.mxu1 %v5000_v45 }
 0x117   : > { %2133 = vmatprep.mubr.f32.mxu1 %v5001_v17  ;;  %s2840_s13 = spop %2839 }
 0x118   : > { %1912 = vmatmul.mubr.f32.gmra.mxu0 %v4998_v36 }
 0x119   : > { %1917 = vmatprep.mubr.f32.mxu0 %v4999_v48 }
 0x11a   : > { %2135 = vmatmul.mubr.f32.gmra.mxu1 %v5002_v9 }
 0x11b   : > { %v2471_v25 = vpop.f32.mrf.mxu1  ;;  %2140 = vmatprep.mubr.f32.mxu1 %v5003_v31 }
 0x11c   : > { %1919 = vmatmul.mubr.f32.gmra.mxu0 %v5000_v45 }
 0x11d   : > { %v2472_v0 = vpop.f32.mrf.mxu1  ;;  %1924 = vmatprep.mubr.f32.mxu0 %v5001_v17 }
 0x11e   : > { %v2473_v22 = vadd.f32 %v2472_v0, %v2471_v25  ;;  %2142 = vmatmul.mubr.f32.gmra.mxu1 %v5004_v34 }
 0x11f   : > { %v2474_v14 = vpop.f32.mrf.mxu1  ;;  %2147 = vmatprep.mubr.f32.mxu1 %v5005_v47 }
 0x120   : > { %1926 = vmatmul.mubr.f32.gmra.mxu0 %v5002_v9 }
 0x121   : > { %v2475_v51 = vpop.f32.mrf.mxu1  ;;  %1931 = vmatprep.mubr.f32.mxu0 %v5003_v31 }
 0x122   : > { %v2476_v19 = vadd.f32 %v2475_v51, %v2474_v14  ;;  %2149 = vmatmul.mubr.f32.gmra.mxu1 %v3921_v20 }
 0x123   : > { %v2391_v62 = vpop.f32.mrf.mxu0  ;;  %v2477_v38 = vpop.f32.mrf.mxu1  ;;  %2154 = vmatprep.mubr.f32.mxu1 %v3942_v27 }
 0x124   : > { %1933 = vmatmul.mubr.f32.gmra.mxu0 %v5004_v34 }
 0x125   : > { %v2392_v15 = vpop.f32.mrf.mxu0  ;;  %v2478_v5 = vpop.f32.mrf.mxu1  ;;  %1938 = vmatprep.mubr.f32.mxu0 %v5005_v47 }
 0x126   : > { %v2393_v26 = vadd.f32 %v2392_v15, %v2391_v62  ;;  %v2479_v42 = vadd.f32 %v2478_v5, %v2477_v38  ;;  %2156 = vmatmul.mubr.f32.gmra.mxu1 %v3949_v3 }
 0x127   : > { %v2394_v29 = vpop.f32.mrf.mxu0  ;;  %2161 = vmatprep.mubr.f32.mxu1 %v3958_v13 }
 0x128   : > { %v4243_v11 = vadd.f32 %v2473_v22, %v2393_v26  ;;  %1940 = vmatmul.mubr.f32.gmra.mxu0 %v3921_v20 }
 0x129   : > { %v2395_v61 = vpop.f32.mrf.mxu0  ;;  %v2480_v21 = vpop.f32.mrf.mxu1  ;;  %1945 = vmatprep.mubr.f32.mxu0 %v3942_v27 }
 0x12a   : > { %v2396_v63 = vadd.f32 %v2395_v61, %v2394_v29  ;;  %2163 = vmatmul.mubr.f32.gmra.mxu1 %v3963_v39 }
 0x12b   : > { %v2397_v46 = vpop.f32.mrf.mxu0  ;;  %v2481_v4 = vpop.f32.mrf.mxu1 }
 0x12c   : > { %v4248_v12 = vadd.f32 %v2476_v19, %v2396_v63  ;;  %v2482_v57 = vadd.f32 %v2481_v4, %v2480_v21  ;;  %1947 = vmatmul.mubr.f32.gmra.mxu0 %v3949_v3 }
 0x12d   : > { %v2398_v41 = vpop.f32.mrf.mxu0  ;;  %v2483_v30 = vpop.f32.mrf.mxu1  ;;  %1952 = vmatprep.mubr.f32.mxu0 %v3958_v13 }
 0x12e   : > { %v2399_v18 = vadd.f32 %v2398_v41, %v2397_v46 }
 0x12f   : > { %v2400_v20 = vpop.f32.mrf.mxu0  ;;  %v2484_v54 = vpop.f32.mrf.mxu1 }
 0x130   : > { %v4252_v28 = vadd.f32 %v2479_v42, %v2399_v18  ;;  %v2485_v27 = vadd.f32 %v2484_v54, %v2483_v30  ;;  %1954 = vmatmul.mubr.f32.gmra.mxu0 %v3963_v39 }
 0x131   : > { %v2401_v6 = vpop.f32.mrf.mxu0  ;;  %v2486_v56 = vpop.f32.mrf.mxu1 }
 0x132   : > { %v2402_v58 = vadd.f32 %v2401_v6, %v2400_v20 }
 0x133   : > { %v2403_v7 = vpop.f32.mrf.mxu0  ;;  %v2487_v23 = vpop.f32.mrf.mxu1 }
 0x134   : > { %v4255_v2 = vadd.f32 %v2482_v57, %v2402_v58  ;;  %v2488_v3 = vadd.f32 %v2487_v23, %v2486_v56 }
 0x135   : > { %v2404_v8 = vpop.f32.mrf.mxu0  ;;  %v2489_v59 = vpop.f32.mrf.mxu1 }
 0x136   : > { %v2405_v60 = vadd.f32 %v2404_v8, %v2403_v7 }
 0x137   : > { %v2406_v13 = vpop.f32.mrf.mxu0  ;;  %v2490_v55 = vpop.f32.mrf.mxu1 }
 0x138   : > { %v4257_v37 = vadd.f32 %v2485_v27, %v2405_v60  ;;  %v2491_v10 = vadd.f32 %v2490_v55, %v2489_v59 }
 0x139   : > { %v2407_v24 = vpop.f32.mrf.mxu0  ;;  %v2492_v52 = vpop.f32.mrf.mxu1 }
 0x13a   : > { %v2408_v1 = vadd.f32 %v2407_v24, %v2406_v13 }
 0x13b   : > { %v2409_v39 = vpop.f32.mrf.mxu0  ;;  %v2493_v32 = vpop.f32.mrf.mxu1 }
 0x13c   : > { %v4259_v35 = vadd.f32 %v2488_v3, %v2408_v1  ;;  %v2494_v44 = vadd.f32 %v2493_v32, %v2492_v52 }
 0x13d   : > { %v2410_v43 = vpop.f32.mrf.mxu0  ;;  %v2495_v53 = vpop.f32.mrf.mxu1 }
 0x13e   : > { %v2411_v50 = vadd.f32 %v2410_v43, %v2409_v39 }
 0x13f   : > { %v2412_v40 = vpop.f32.mrf.mxu0  ;;  %v2496_v33 = vpop.f32.mrf.mxu1 }
 0x140   : > { %v4261_v49 = vadd.f32 %v2491_v10, %v2411_v50  ;;  %v2497_v36 = vadd.f32 %v2496_v33, %v2495_v53 }
 0x141   : > { %v2413_v48 = vpop.f32.mrf.mxu0  ;;  %v2498_v45 = vpop.f32.mrf.mxu1 }
 0x142   : > { %v2414_v17 = vadd.f32 %v2413_v48, %v2412_v40 }
 0x143   : > { %v2415_v9 = vpop.f32.mrf.mxu0  ;;  %v2499_v25 = vpop.f32.mrf.mxu1 }
 0x144   : > { %v4263_v16 = vadd.f32 %v2494_v44, %v2414_v17  ;;  %v2500_v31 = vadd.f32 %v2499_v25, %v2498_v45 }
 0x145   : > { %v2416_v0 = vpop.f32.mrf.mxu0 }
 0x146   : > { %v2417_v22 = vadd.f32 %v2416_v0, %v2415_v9 }
 0x147   : > { %v2418_v34 = vpop.f32.mrf.mxu0 }
 0x148   : > { %v4265_v14 = vadd.f32 %v2497_v36, %v2417_v22 }
 0x149   : > { %v2419_v47 = vpop.f32.mrf.mxu0 }
 0x14a   : > { %v2420_v51 = vadd.f32 %v2419_v47, %v2418_v34 }
 0x14c   : > { %v4267_v19 = vadd.f32 %v2500_v31, %v2420_v51 }
 0x154   : > { %v2501_v62 = vpop.f32.mrf.mxu1 }
 0x156   : > { %v2502_v38 = vpop.f32.mrf.mxu1 }
 0x157   : > { %v2503_v15 = vadd.f32 %v2502_v38, %v2501_v62 }
 0x158   : > { %v2504_v5 = vpop.f32.mrf.mxu1 }
 0x15a   : > { %v2505_v26 = vpop.f32.mrf.mxu1 }
 0x15b   : > { %v2506_v42 = vadd.f32 %v2505_v26, %v2504_v5 }
 0x15c   : > { %v2421_v29 = vpop.f32.mrf.mxu0  ;;  %v2507_v61 = vpop.f32.mrf.mxu1 }
 0x15e   : > { %v2422_v21 = vpop.f32.mrf.mxu0  ;;  %v2508_v63 = vpop.f32.mrf.mxu1 }
 0x15f   : > { %v2423_v46 = vadd.f32 %v2422_v21, %v2421_v29  ;;  %v2509_v4 = vadd.f32 %v2508_v63, %v2507_v61 }
 0x160   : > { %v2424_v57 = vpop.f32.mrf.mxu0  ;;  %v2510_v41 = vpop.f32.mrf.mxu1 }
 0x161   : > { %v4269_v30 = vadd.f32 %v2503_v15, %v2423_v46 }
 0x162   : > { %v2425_v18 = vpop.f32.mrf.mxu0  ;;  %v2511_v20 = vpop.f32.mrf.mxu1 }
 0x163   : > { %5006 = vst [vmem:[#allocation50_spill] sm:$0xff] %v4269_v30  ;;  %v2426_v54 = vadd.f32 %v2425_v18, %v2424_v57  ;;  %v2512_v27 = vadd.f32 %v2511_v20, %v2510_v41 }
 0x164   : > { %v2427_v6 = vpop.f32.mrf.mxu0  ;;  %v2513_v56 = vpop.f32.mrf.mxu1 }
 0x165   : > { %v4271_v58 = vadd.f32 %v2506_v42, %v2426_v54 }
 0x166   : > { %v2428_v7 = vpop.f32.mrf.mxu0  ;;  %v2514_v23 = vpop.f32.mrf.mxu1 }
 0x167   : > { %5007 = vst [vmem:[#allocation4_spill] sm:$0xff] %v4271_v58  ;;  %v2429_v3 = vadd.f32 %v2428_v7, %v2427_v6  ;;  %v2515_v8 = vadd.f32 %v2514_v23, %v2513_v56 }
 0x168   : > { %v2430_v59 = vpop.f32.mrf.mxu0  ;;  %v2516_v60 = vpop.f32.mrf.mxu1 }
 0x169   : > { %v4273_v13 = vadd.f32 %v2509_v4, %v2429_v3 }
 0x16a   : > { %v2431_v55 = vpop.f32.mrf.mxu0  ;;  %v2517_v10 = vpop.f32.mrf.mxu1 }
 0x16b   : > { %5008 = vst [vmem:[#allocation5_spill] sm:$0xff] %v4273_v13  ;;  %v2432_v24 = vadd.f32 %v2431_v55, %v2430_v59  ;;  %v2518_v52 = vadd.f32 %v2517_v10, %v2516_v60 }
 0x16c   : > { %v2433_v1 = vpop.f32.mrf.mxu0  ;;  %v4275_v39 = vpop.f32.mrf.mxu1 }
 0x16d   : > { %v4277_v32 = vadd.f32 %v2512_v27, %v2432_v24 }
 0x16e   : > { %v2434_v44 = vpop.f32.mrf.mxu0  ;;  %v4279_v43 = vpop.f32.mrf.mxu1 }
 0x16f   : > { %5009 = vst [vmem:[#allocation52_spill] sm:$0xff] %v4277_v32  ;;  %v2435_v53 = vadd.f32 %v2434_v44, %v2433_v1 }
 0x170   : > { %v2436_v50 = vpop.f32.mrf.mxu0  ;;  %v4281_v40 = vpop.f32.mrf.mxu1 }
 0x171   : > { %v4283_v33 = vadd.f32 %v2515_v8, %v2435_v53 }
 0x172   : > { %v2437_v36 = vpop.f32.mrf.mxu0  ;;  %v4285_v48 = vpop.f32.mrf.mxu1 }
 0x173   : > { %5010 = vst [vmem:[#allocation54_spill] sm:$0xff] %v4283_v33  ;;  %v2438_v45 = vadd.f32 %v2437_v36, %v2436_v50 }
 0x174   : > { %v2551_v17 = vpop.f32.mrf.mxu0  ;;  %v4287_v9 = vpop.f32.mrf.mxu1 }
 0x175   : > { %v4289_v25 = vadd.f32 %v2518_v52, %v2438_v45 }
 0x176   : > { %v2552_v31 = vpop.f32.mrf.mxu0  ;;  %v4291_v0 = vpop.f32.mrf.mxu1 }
 0x177   : > { %5011 = vst [vmem:[#allocation6_spill] sm:$0xff] %v4289_v25 }
 0x178   : > { %v2554_v22 = vpop.f32.mrf.mxu0 }
 0x17a   : > { %v2555_v34 = vpop.f32.mrf.mxu0  ;;  %v4293_v47 = vpop.f32.mrf.mxu1 }
 0x17c   : > { %v4295_v51 = vpop.f32.mrf.mxu0  ;;  %v4297_v62 = vpop.f32.mrf.mxu1 }
 0x17e   : > { %v4299_v38 = vpop.f32.mrf.mxu0  ;;  %v4301_v15 = vpop.f32.mrf.mxu1 }
 0x180   : > { %v4303_v5 = vpop.f32.mrf.mxu0  ;;  %v4305_v26 = vpop.f32.mrf.mxu1 }
 0x182   : > { %v4307_v42 = vpop.f32.mrf.mxu0  ;;  %v4309_v29 = vpop.f32.mrf.mxu1 }
 0x184   : > { %v4311_v61 = vpop.f32.mrf.mxu0  ;;  %v4313_v21 = vpop.f32.mrf.mxu1 }
 0x186   : > { %v4315_v63 = vpop.f32.mrf.mxu0  ;;  %v4317_v46 = vpop.f32.mrf.mxu1 }
 0x188   : > { %v4319_v4 = vpop.f32.mrf.mxu0  ;;  %v4321_v57 = vpop.f32.mrf.mxu1 }
 0x18a   : > { %v4323_v41 = vpop.f32.mrf.mxu0  ;;  %v4325_v18 = vpop.f32.mrf.mxu1 }
 0x18c   : > { %v4327_v20 = vpop.f32.mrf.mxu0  ;;  %v4329_v54 = vpop.f32.mrf.mxu1 }
 0x18e   : > { %v4331_v27 = vpop.f32.mrf.mxu0  ;;  %v4333_v6 = vpop.f32.mrf.mxu1 }
 0x190   : > { %v4335_v56 = vpop.f32.mrf.mxu0  ;;  %v4337_v7 = vpop.f32.mrf.mxu1 }
 0x192   : > { %v4339_v23 = vpop.f32.mrf.mxu0  ;;  %v4341_v3 = vpop.f32.mrf.mxu1 }
 0x193   : > { %5012 = vst [vmem:[#allocation7_spill] sm:$0xff] %v4341_v3 }
 0x194   : > { %v4343_v8 = vpop.f32.mrf.mxu0  ;;  %v4345_v59 = vpop.f32.mrf.mxu1 }
 0x195   : > { %5013 = vst [vmem:[#allocation56_spill] sm:$0xff] %v4345_v59  ;;  %v2556_v59 = vadd.f32 %v2555_v34, %v2554_v22  ;;  %v2562_v34 = vadd.f32 %v4307_v42, %v4303_v5 }
 0x196   : > { %v4347_v60 = vpop.f32.mrf.mxu0  ;;  %v4349_v55 = vpop.f32.mrf.mxu1 }
 0x197   : > { %5014 = vst [vmem:[#allocation9_spill] sm:$0xff] %v4349_v55  ;;  %v1302_v42 = vadd.f32 %v2562_v34, %v4255_v2 }
 0x198   : > { %v4351_v10 = vpop.f32.mrf.mxu0  ;;  %v4353_v24 = vpop.f32.mrf.mxu1 }
 0x199   : > { %5015 = vst [vmem:[#allocation10_spill] sm:$0xff] %v4353_v24 }
 0x19a   : > { %v4355_v52 = vpop.f32.mrf.mxu0  ;;  %v4357_v1 = vpop.f32.mrf.mxu1 }
 0x19b   : > { %5016 = vst [vmem:[#allocation57_spill] sm:$0xff] %v4357_v1 }
 0x19c   : > { %v4359_v44 = vpop.f32.mrf.mxu0  ;;  %v4361_v53 = vpop.f32.mrf.mxu1 }
 0x19d   : > { %5017 = vst [vmem:[#allocation12_spill] sm:$0xff] %v4361_v53 }
 0x19e   : > { %v4363_v50 = vpop.f32.mrf.mxu0  ;;  %v4365_v36 = vpop.f32.mrf.mxu1 }
 0x19f   : > { %5018 = vst [vmem:[#allocation11_spill] sm:$0xff] %v4363_v50  ;;  %5019 = vst [vmem:[#allocation13_spill] sm:$0xff] %v4365_v36 }
 0x1a0   : > { %v4367_v45 = vpop.f32.mrf.mxu0  ;;  %v4369_v25 = vpop.f32.mrf.mxu1 }
 0x1a1   : > { %5020 = vst [vmem:[#allocation14_spill] sm:$0xff] %v4367_v45  ;;  %5021 = vst [vmem:[#allocation16_spill] sm:$0xff] %v4369_v25 }
 0x1a2   : > { %v4371_v33 = vpop.f32.mrf.mxu0  ;;  %v4373_v32 = vpop.f32.mrf.mxu1 }
 0x1a3   : > { %5022 = vst [vmem:[#allocation60_spill] sm:$0xff] %v4371_v33  ;;  %5023 = vst [vmem:[#allocation18_spill] sm:$0xff] %v4373_v32 }
 0x1a4   : > { %v4375_v13 = vpop.f32.mrf.mxu0  ;;  %v4377_v58 = vpop.f32.mrf.mxu1 }
 0x1a5   : > { %5024 = vst [vmem:[#allocation15_spill] sm:$0xff] %v4375_v13  ;;  %5025 = vst [vmem:[#allocation61_spill] sm:$0xff] %v4377_v58  ;;  %v2553_v58 = vadd.f32 %v2552_v31, %v2551_v17  ;;  %v2559_v17 = vadd.f32 %v4299_v38, %v4295_v51 }
 0x1a6   : > { %v4379_v1 = vpop.f32.mrf.mxu0  ;;  %v4381_v24 = vpop.f32.mrf.mxu1 }
 0x1a7   : > { %5026 = vst [vmem:[#allocation19_spill] sm:$0xff] %v4379_v1  ;;  %5027 = vst [vmem:[#allocation64_spill] sm:$0xff] %v4381_v24 }
 0x1a8   : > { %v4383_v53 = vpop.f32.mrf.mxu0  ;;  %v4385_v55 = vpop.f32.mrf.mxu1 }
 0x1a9   : > { %5028 = vst [vmem:[#allocation20_spill] sm:$0xff] %v4383_v53  ;;  %5029 = vst [vmem:[#allocation17_spill] sm:$0xff] %v4385_v55  ;;  %v1275_v55 = vadd.f32 %v2553_v58, %v4243_v11  ;;  %v2636_v11 = vadd.f32 %v4285_v48, %v4281_v40 }
 0x1aa   : > { %v4387_v36 = vpop.f32.mrf.mxu0  ;;  %v4389_v45 = vpop.f32.mrf.mxu1 }
 0x1ab   : > { %5030 = vst [vmem:[#allocation66_spill] sm:$0xff] %v4387_v36  ;;  %5031 = vst [vmem:[#allocation21_spill] sm:$0xff] %v4389_v45  ;;  %v2633_v45 = vadd.f32 %v4279_v43, %v4275_v39  ;;  %v4414_v39 = vld [vmem:[%s4559_s2] ss:$0 sm:$0xff] }
 0x1ac   : > { %v4391_v25 = vpop.f32.mrf.mxu0  ;;  %v4393_v33 = vpop.f32.mrf.mxu1 }
 0x1ad   : > { %5032 = vst [vmem:[#allocation27_spill] sm:$0xff] %v4391_v25  ;;  %5033 = vst [vmem:[#allocation29_spill] sm:$0xff] %v4393_v33  ;;  %v1518_v50 = vadd.f32 %v2633_v45, %v1275_v55 }
 0x1ae   : > { %v4395_v32 = vpop.f32.mrf.mxu0  ;;  %v2791_v13 = vpop.f32.mrf.mxu1 }
 0x1af   : > { %5034 = vst [vmem:[#allocation24_spill] sm:$0xff] %v4395_v32  ;;  %v1284_v32 = vadd.f32 %v2556_v59, %v4248_v12 }
 0x1b0   : > { %v4397_v30 = vpop.f32.mrf.mxu0  ;;  %v2792_v1 = vpop.f32.mrf.mxu1 }
 0x1b1   : > { %5035 = vst [vmem:[#allocation26_spill] sm:$0xff] %v4397_v30  ;;  %v2793_v22 = vadd.f32 %v2792_v1, %v2791_v13  ;;  %v1529_v59 = vadd.f32 %v2636_v11, %v1284_v32  ;;  %v2639_v13 = vadd.f32 %v4291_v0, %v4287_v9  ;;  %v2565_v1 = vadd.f32 %v4315_v63, %v4311_v61 }
 0x1b2   : > { %v4399_v24 = vpop.f32.mrf.mxu0  ;;  %v2794_v53 = vpop.f32.mrf.mxu1  ;;  %v2568_v63 = vadd.f32 %v4323_v41, %v4319_v4 }
 0x1b3   : > { %5036 = vst [vmem:[#allocation31_spill] sm:$0xff] %v4399_v24  ;;  %v1311_v2 = vadd.f32 %v2565_v1, %v4257_v37  ;;  %v2571_v37 = vadd.f32 %v4331_v27, %v4327_v20  ;;  %v2574_v20 = vadd.f32 %v4339_v23, %v4335_v56 }
 0x1b4   : > { %v2711_v36 = vpop.f32.mrf.mxu0  ;;  %v2795_v3 = vpop.f32.mrf.mxu1  ;;  %v1320_v4 = vadd.f32 %v2568_v63, %v4259_v35 }
 0x1b5   : > { %v2796_v5 = vadd.f32 %v2795_v3, %v2794_v53  ;;  %v1338_v23 = vadd.f32 %v2574_v20, %v4263_v16 }
 0x1b6   : > { %v2712_v25 = vpop.f32.mrf.mxu0  ;;  %v2797_v33 = vpop.f32.mrf.mxu1 }
 0x1b7   : > { %v2713_v31 = vadd.f32 %v2712_v25, %v2711_v36  ;;  %v1293_v25 = vadd.f32 %v2559_v17, %v4252_v28  ;;  %v2642_v17 = vadd.f32 %v4297_v62, %v4293_v47  ;;  %v2645_v47 = vadd.f32 %v4305_v26, %v4301_v15 }
 0x1b8   : > { %v2714_v30 = vpop.f32.mrf.mxu0  ;;  %v2798_v24 = vpop.f32.mrf.mxu1  ;;  %v2648_v15 = vadd.f32 %v4313_v21, %v4309_v29  ;;  %v2651_v29 = vadd.f32 %v4321_v57, %v4317_v46 }
 0x1b9   : > { %v1851_v58 = vadd.f32 %v2713_v31, %v1518_v50  ;;  %v1540_v45 = vadd.f32 %v2639_v13, %v1293_v25  ;;  %v2799_v3 = vadd.f32 %v2798_v24, %v2797_v33  ;;  %v1551_v53 = vadd.f32 %v2642_v17, %v1302_v42 }
 0x1ba   : > { %v2715_v12 = vpop.f32.mrf.mxu0  ;;  %v2800_v43 = vpop.f32.mrf.mxu1  ;;  %v1562_v24 = vadd.f32 %v2645_v47, %v1311_v2  ;;  %v2580_v47 = vadd.f32 %v4355_v52, %v4351_v10 }
 0x1bb   : > { %v2060_v51 = vadd.f32 %v2793_v22, %v1851_v58  ;;  %v2716_v38 = vadd.f32 %v2715_v12, %v2714_v30 }
 0x1bc   : > { %v2717_v55 = vpop.f32.mrf.mxu0  ;;  %v2801_v36 = vpop.f32.mrf.mxu1 }
 0x1bd   : > { %v2175_v40 = vmul.f32 %v4414_v39, %v2060_v51  ;;  %v1858_v48 = vadd.f32 %v2716_v38, %v1529_v59  ;;  %v2802_v33 = vadd.f32 %v2801_v36, %v2800_v43  ;;  %v1329_v36 = vadd.f32 %v2571_v37, %v4261_v49 }
 0x1be   : > { %v2718_v50 = vpop.f32.mrf.mxu0  ;;  %v2803_v32 = vpop.f32.mrf.mxu1 }
 0x1bf   : > { %2979 = vlog2.f32 %v2175_v40  ;;  %v2067_v28 = vadd.f32 %v2796_v5, %v1858_v48  ;;  %v2719_v30 = vadd.f32 %v2718_v50, %v2717_v55  ;;  %v1573_v5 = vadd.f32 %v2648_v15, %v1320_v4 }
 0x1c0   : > { %v2720_v31 = vpop.f32.mrf.mxu0  ;;  %v2804_v9 = vpop.f32.mrf.mxu1  ;;  %v1584_v56 = vadd.f32 %v2651_v29, %v1329_v36  ;;  %v5039_v36 = vld [vmem:[#allocation56_spill] sm:$0xff]  ;;  %v5040_v29 = vld [vmem:[#allocation50_spill] sm:$0xff] }
 0x1c1   : > { %v2176_v0 = vmul.f32 %v4414_v39, %v2067_v28  ;;  %v1865_v11 = vadd.f32 %v2719_v30, %v1540_v45  ;;  %v2805_v43 = vadd.f32 %v2804_v9, %v2803_v32  ;;  %v4443_v45 = vstv %s2840_s13 }
 0x1c2   : > { %v2721_v58 = vpop.f32.mrf.mxu0  ;;  %v2806_v61 = vpop.f32.mrf.mxu1 }
 0x1c3   : > { %2981 = vlog2.f32 %v2176_v0  ;;  %v2074_v22 = vadd.f32 %v2799_v3, %v1865_v11  ;;  %v2722_v34 = vadd.f32 %v2721_v58, %v2720_v31  ;;  %v2577_v31 = vadd.f32 %v4347_v60, %v4343_v8 }
 0x1c4   : > { %v2723_v62 = vpop.f32.mrf.mxu0  ;;  %v2807_v12 = vpop.f32.mrf.mxu1 }
 0x1c5   : > { %v2177_v59 = vmul.f32 %v4414_v39, %v2074_v22  ;;  %v1872_v25 = vadd.f32 %v2722_v34, %v1551_v53  ;;  %v2808_v17 = vadd.f32 %v2807_v12, %v2806_v61  ;;  %v2654_v53 = vadd.f32 %v4329_v54, %v4325_v18 }
 0x1c6   : > { %v2724_v51 = vpop.f32.mrf.mxu0  ;;  %v2809_v38 = vpop.f32.mrf.mxu1  ;;  %v1347_v60 = vadd.f32 %v2577_v31, %v4265_v14 }
 0x1c7   : > { %2983 = vlog2.f32 %v2177_v59  ;;  %v2081_v41 = vadd.f32 %v2802_v33, %v1872_v25  ;;  %v2725_v55 = vadd.f32 %v2724_v51, %v2723_v62  ;;  %v1595_v8 = vadd.f32 %v2654_v53, %v1338_v23 }
 0x1c8   : > { %v2726_v13 = vpop.f32.mrf.mxu0  ;;  %v2810_v40 = vpop.f32.mrf.mxu1  ;;  %v2657_v33 = vadd.f32 %v4337_v7, %v4333_v6 }
 0x1c9   : > { %v2178_v26 = vmul.f32 %v4414_v39, %v2081_v41  ;;  %v1879_v48 = vadd.f32 %v2725_v55, %v1562_v24  ;;  %v2811_v2 = vadd.f32 %v2810_v40, %v2809_v38  ;;  %v1356_v41 = vadd.f32 %v2580_v47, %v4267_v19  ;;  %v5037_v55 = vld [vmem:[#allocation11_spill] sm:$0xff] }
 0x1ca   : > { %v2727_v27 = vpop.f32.mrf.mxu0  ;;  %v2812_v35 = vpop.f32.mrf.mxu1  ;;  %v1606_v52 = vadd.f32 %v2657_v33, %v1347_v60  ;;  %v5047_v60 = vld [vmem:[#allocation19_spill] sm:$0xff]  ;;  %v5048_v33 = vld [vmem:[#allocation57_spill] sm:$0xff] }
 0x1cb   : > { %2985 = vlog2.f32 %v2178_v26  ;;  %v2088_v42 = vadd.f32 %v2805_v43, %v1879_v48  ;;  %v2728_v1 = vadd.f32 %v2727_v27, %v2726_v13  ;;  %v2583_v13 = vadd.f32 %v5037_v55, %v4359_v44  ;;  %v5038_v43 = vld [vmem:[#allocation7_spill] sm:$0xff] }
 0x1cc   : > { %v2980_v50 = vpop.eup %2979  ;;  %v2729_v21 = vpop.f32.mrf.mxu0  ;;  %v2660_v20 = vadd.f32 %v5039_v36, %v5038_v43 }
 0x1cd   : > { %v2813_v32 = vpop.f32.mrf.mxu1  ;;  %v2192_v28 = vmul.f32 0.6931472, %v2980_v50  ;;  %v2179_v49 = vmul.f32 %v4414_v39, %v2088_v42  ;;  %v1886_v30 = vadd.f32 %v2728_v1, %v1573_v5 }
 0x1ce   : > { %v2730_v9 = vpop.f32.mrf.mxu0  ;;  %v2814_v24 = vadd.f32 %v2813_v32, %v2812_v35  ;;  %v1617_v50 = vadd.f32 %v2660_v20, %v1356_v41  ;;  %v5041_v32 = vld [vmem:[#allocation14_spill] sm:$0xff] }
 0x1cf   : > { %v2815_v0 = vpop.f32.mrf.mxu1  ;;  %2987 = vlog2.f32 %v2179_v49  ;;  %v2095_v11 = vadd.f32 %v2808_v17, %v1886_v30  ;;  %v2224_v46 = vmul.f32 %v4443_v45, %v2192_v28  ;;  %v2731_v57 = vadd.f32 %v2730_v9, %v2729_v21  ;;  %v5042_v28 = vld [vmem:[#allocation60_spill] sm:$0xff] }
 0x1d0   : > { %v2982_v3 = vpop.eup %2981  ;;  %v2732_v58 = vpop.f32.mrf.mxu0  ;;  %v1365_v21 = vadd.f32 %v2583_v13, %v5040_v29  ;;  %v2586_v49 = vadd.f32 %v5042_v28, %v5041_v32 }
 0x1d1   : > { %v2816_v61 = vpop.f32.mrf.mxu1  ;;  %v2194_v63 = vmul.f32 0.6931472, %v2982_v3  ;;  %v2180_v16 = vmul.f32 %v4414_v39, %v2095_v11  ;;  %v2240_v22 = vmul.f32 1.442695, %v2224_v46  ;;  %v1893_v34 = vadd.f32 %v2731_v57, %v1584_v56  ;;  %v5044_v11 = vld [vmem:[#allocation10_spill] sm:$0xff] }
 0x1d2   : > { %v2733_v62 = vpop.f32.mrf.mxu0  ;;  %v2817_v27 = vadd.f32 %v2816_v61, %v2815_v0  ;;  %v5043_v0 = vld [vmem:[#allocation9_spill] sm:$0xff] }
 0x1d3   : > { %v2818_v12 = vpop.f32.mrf.mxu1  ;;  %2989 = vlog2.f32 %v2180_v16  ;;  %v2225_v59 = vmul.f32 %v4443_v45, %v2194_v63  ;;  %v2102_v18 = vadd.f32 %v2811_v2, %v1893_v34  ;;  %v2734_v54 = vadd.f32 %v2733_v62, %v2732_v58 }
 0x1d4   : > { %v2984_v25 = vpop.eup %2983  ;;  %2991 = vpow2.f32 %v2240_v22  ;;  %v2735_v37 = vpop.f32.mrf.mxu0  ;;  %v2663_v46 = vadd.f32 %v5044_v11, %v5043_v0  ;;  %v5045_v22 = vld [vmem:[#allocation4_spill] sm:$0xff] }
 0x1d5   : > { %v2819_v51 = vpop.f32.mrf.mxu1  ;;  %v2196_v38 = vmul.f32 0.6931472, %v2984_v25  ;;  %v2242_v14 = vmul.f32 1.442695, %v2225_v59  ;;  %v2181_v4 = vmul.f32 %v4414_v39, %v2102_v18  ;;  %v1900_v10 = vadd.f32 %v2734_v54, %v1595_v8  ;;  %v5046_v8 = vld [vmem:[#allocation15_spill] sm:$0xff] }
 0x1d6   : > { %v2736_v40 = vpop.f32.mrf.mxu0  ;;  %v2820_v57 = vadd.f32 %v2819_v51, %v2818_v12  ;;  %v1628_v16 = vadd.f32 %v2663_v46, %v1365_v21  ;;  %v1374_v34 = vadd.f32 %v2586_v49, %v5045_v22  ;;  %v2589_v47 = vadd.f32 %v5047_v60, %v5046_v8  ;;  %v5055_v49 = vld [vmem:[#allocation52_spill] sm:$0xff] }
 0x1d7   : > { %v2821_v15 = vpop.f32.mrf.mxu1  ;;  %v2226_v26 = vmul.f32 %v4443_v45, %v2196_v38  ;;  %2993 = vpow2.f32 %v2242_v14  ;;  %v2109_v6 = vadd.f32 %v2814_v24, %v1900_v10  ;;  %v2737_v7 = vadd.f32 %v2736_v40, %v2735_v37  ;;  %v5049_v24 = vld [vmem:[#allocation12_spill] sm:$0xff]  ;;  %v5050_v40 = vld [vmem:[#allocation5_spill] sm:$0xff] }
 0x1d8   : > { %v2986_v48 = vpop.eup %2985  ;;  %2995 = vlog2.f32 %v2181_v4  ;;  %v2738_v35 = vpop.f32.mrf.mxu0  ;;  %v2666_v37 = vadd.f32 %v5049_v24, %v5048_v33  ;;  %v5061_v33 = vld [vmem:[#allocation26_spill] sm:$0xff]  ;;  %v5062_v24 = vld [vmem:[#allocation31_spill] sm:$0xff] }
 0x1d9   : > { %v2822_v5 = vpop.f32.mrf.mxu1  ;;  %v2198_v19 = vmul.f32 0.6931472, %v2986_v48  ;;  %v2244_v42 = vmul.f32 1.442695, %v2226_v26  ;;  %v2182_v44 = vmul.f32 %v4414_v39, %v2109_v6  ;;  %v1907_v1 = vadd.f32 %v2737_v7, %v1606_v52  ;;  %v5051_v6 = vld [vmem:[#allocation20_spill] sm:$0xff]  ;;  %v5052_v7 = vld [vmem:[#allocation66_spill] sm:$0xff] }
 0x1da   : > { %v2739_v30 = vpop.f32.mrf.mxu0  ;;  %v2823_v51 = vadd.f32 %v2822_v5, %v2821_v15  ;;  %v1639_v13 = vadd.f32 %v2666_v37, %v1374_v34  ;;  %v1383_v26 = vadd.f32 %v2589_v47, %v5050_v40  ;;  %v2592_v48 = vadd.f32 %v5052_v7, %v5051_v6  ;;  %v5053_v5 = vld [vmem:[#allocation13_spill] sm:$0xff]  ;;  %v5060_v47 = vld [vmem:[#allocation54_spill] sm:$0xff] }
 0x1db   : > { %v2824_v17 = vpop.f32.mrf.mxu1  ;;  %v2227_v56 = vmul.f32 %v4443_v45, %v2198_v19  ;;  %2997 = vpow2.f32 %v2244_v42  ;;  %v2116_v23 = vadd.f32 %v2817_v27, %v1907_v1  ;;  %v2740_v31 = vadd.f32 %v2739_v30, %v2738_v35  ;;  %v5054_v19 = vld [vmem:[#allocation16_spill] sm:$0xff] }
 0x1dc   : > { %v2988_v9 = vpop.eup %2987  ;;  %2999 = vlog2.f32 %v2182_v44  ;;  %v2741_v3 = vpop.f32.mrf.mxu0  ;;  %v2669_v42 = vadd.f32 %v5054_v19, %v5053_v5  ;;  %v1392_v30 = vadd.f32 %v2592_v48, %v5055_v49  ;;  %v2598_v37 = vadd.f32 %v5062_v24, %v5061_v33 }
 0x1dd   : > { %v2825_v53 = vpop.f32.mrf.mxu1  ;;  %v2200_v2 = vmul.f32 0.6931472, %v2988_v9  ;;  %v2246_v58 = vmul.f32 1.442695, %v2227_v56  ;;  %v2183_v61 = vmul.f32 %v4414_v39, %v2116_v23  ;;  %v1914_v63 = vadd.f32 %v2740_v31, %v1617_v50  ;;  %v5056_v56 = vld [vmem:[#allocation27_spill] sm:$0xff]  ;;  %v5057_v23 = vld [vmem:[#allocation24_spill] sm:$0xff] }
 0x1de   : > { %v2742_v62 = vpop.f32.mrf.mxu0  ;;  %v2826_v28 = vadd.f32 %v2825_v53, %v2824_v17  ;;  %v2595_v31 = vadd.f32 %v5057_v23, %v5056_v56  ;;  %v1650_v46 = vadd.f32 %v2669_v42, %v1383_v26 }
 0x1df   : > { %v2827_v59 = vpop.f32.mrf.mxu1  ;;  %v2228_v12 = vmul.f32 %v4443_v45, %v2200_v2  ;;  %3001 = vpow2.f32 %v2246_v58  ;;  %v2123_v18 = vadd.f32 %v2820_v57, %v1914_v63  ;;  %v2743_v54 = vadd.f32 %v2742_v62, %v2741_v3  ;;  %v5058_v58 = vld [vmem:[#allocation18_spill] sm:$0xff] }
 0x1e0   : > { %v2990_v25 = vpop.eup %2989  ;;  %3003 = vlog2.f32 %v2183_v61  ;;  %v2744_v38 = vpop.f32.mrf.mxu0  ;;  %v5059_v61 = vld [vmem:[#allocation61_spill] sm:$0xff]  ;;  %v1401_v62 = vadd.f32 %v2595_v31, %v5060_v47 }
 0x1e1   : > { %v2828_v14 = vpop.f32.mrf.mxu1  ;;  %v2992_v4 = vpop.eup %2991  ;;  %v2202_v10 = vmul.f32 0.6931472, %v2990_v25  ;;  %v2248_v52 = vmul.f32 1.442695, %v2228_v12  ;;  %v2184_v41 = vmul.f32 %v4414_v39, %v2123_v18  ;;  %v1921_v55 = vadd.f32 %v2743_v54, %v1628_v16 }
 0x1e2   : > { %2273 = vst.msk [vmem:[%s4481_s16] sm:$0xff] %vm2272_vm0, %v2992_v4  ;;  %v2745_v43 = vpop.f32.mrf.mxu0  ;;  %v2672_v63 = vadd.f32 %v5059_v61, %v5058_v58  ;;  %v2829_v8 = vadd.f32 %v2828_v14, %v2827_v59 }
 0x1e3   : > { %v2830_v36 = vpop.f32.mrf.mxu1  ;;  %v2229_v15 = vmul.f32 %v4443_v45, %v2202_v10  ;;  %3005 = vpow2.f32 %v2248_v52  ;;  %v2130_v20 = vadd.f32 %v2823_v51, %v1921_v55  ;;  %v2746_v27 = vadd.f32 %v2745_v43, %v2744_v38  ;;  %v5063_v10 = vld [vmem:[#allocation64_spill] sm:$0xff]  ;;  %v5064_v52 = vld [vmem:[#allocation17_spill] sm:$0xff] }
 0x1e4   : > { %v2994_v35 = vpop.eup %2993  ;;  %3007 = vlog2.f32 %v2184_v41  ;;  %v2747_v44 = vpop.f32.mrf.mxu0  ;;  %v1661_v60 = vadd.f32 %v2672_v63, %v1392_v30  ;;  %v2675_v41 = vadd.f32 %v5064_v52, %v5063_v10 }
 0x1e5   : > { %v2831_v1 = vpop.f32.mrf.mxu1  ;;  %v2996_v50 = vpop.eup %2995  ;;  %v2250_v29 = vmul.f32 1.442695, %v2229_v15  ;;  %2274 = vst.msk [vmem:[%s4481_s16 + $0x8] sm:$0xff] %vm2272_vm0, %v2994_v35  ;;  %v2185_v21 = vmul.f32 %v4414_v39, %v2130_v20  ;;  %v1928_v32 = vadd.f32 %v2746_v27, %v1639_v13  ;;  %v5065_v20 = vld [vmem:[#allocation6_spill] sm:$0xff] }
 0x1e6   : > { %v2204_v9 = vmul.f32 0.6931472, %v2996_v50  ;;  %v2748_v0 = vpop.f32.mrf.mxu0  ;;  %v2832_v26 = vadd.f32 %v2831_v1, %v2830_v36  ;;  %v1672_v6 = vadd.f32 %v2675_v41, %v1401_v62  ;;  %v1410_v27 = vadd.f32 %v2598_v37, %v5065_v20 }
 0x1e7   : > { %v2833_v11 = vpop.f32.mrf.mxu1  ;;  %3009 = vpow2.f32 %v2250_v29  ;;  %v2137_v57 = vadd.f32 %v2826_v28, %v1928_v32  ;;  %v2749_v3 = vadd.f32 %v2748_v0, %v2747_v44  ;;  %v5066_v29 = vld [vmem:[#allocation21_spill] sm:$0xff] }
 0x1e8   : > { %v2998_v2 = vpop.eup %2997  ;;  %v2230_v16 = vmul.f32 %v4443_v45, %v2204_v9  ;;  %3011 = vlog2.f32 %v2185_v21  ;;  %v2750_v17 = vpop.f32.mrf.mxu0  ;;  %v5067_v21 = vld [vmem:[#allocation29_spill] sm:$0xff] }
 0x1e9   : > { %v3000_v53 = vpop.eup %2999  ;;  %2275 = vst.msk [vmem:[%s4481_s16 + $0x10] sm:$0xff] %vm2272_vm0, %v2998_v2  ;;  %v2186_v22 = vmul.f32 %v4414_v39, %v2137_v57  ;;  %v1935_v34 = vadd.f32 %v2749_v3, %v1650_v46  ;;  %v2834_v25 = vpop.f32.mrf.mxu1  ;;  %v2678_v36 = vadd.f32 %v5067_v21, %v5066_v29 }
 0x1ea   : > { %v2252_v12 = vmul.f32 1.442695, %v2230_v16  ;;  %v2206_v18 = vmul.f32 0.6931472, %v3000_v53  ;;  %v2751_v54 = vpop.f32.mrf.mxu0  ;;  %v2835_v28 = vadd.f32 %v2834_v25, %v2833_v11 }
 0x1eb   : > { %3013 = vlog2.f32 %v2186_v22  ;;  %v2144_v51 = vadd.f32 %v2829_v8, %v1935_v34  ;;  %v2752_v38 = vadd.f32 %v2751_v54, %v2750_v17  ;;  %v2836_v15 = vpop.f32.mrf.mxu1  ;;  %v1683_v31 = vadd.f32 %v2678_v36, %v1410_v27 }
 0x1ec   : > { %v3002_v4 = vpop.eup %3001  ;;  %3015 = vpow2.f32 %v2252_v12  ;;  %v2231_v59 = vmul.f32 %v4443_v45, %v2206_v18  ;;  %v2753_v14 = vpop.f32.mrf.mxu0 }
 0x1ed   : > { %v3004_v55 = vpop.eup %3003  ;;  %2276 = vst.msk [vmem:[%s4481_s16 + $0x18] sm:$0xff] %vm2272_vm0, %v3002_v4  ;;  %v2187_v13 = vmul.f32 %v4414_v39, %v2144_v51  ;;  %v1942_v40 = vadd.f32 %v2752_v38, %v1661_v60  ;;  %v2837_v23 = vpop.f32.mrf.mxu1 }
 0x1ee   : > { %v2254_v7 = vmul.f32 1.442695, %v2231_v59  ;;  %v2208_v48 = vmul.f32 0.6931472, %v3004_v55  ;;  %v2754_v43 = vpop.f32.mrf.mxu0  ;;  %v2838_v11 = vadd.f32 %v2837_v23, %v2836_v15 }
 0x1ef   : > { %3017 = vlog2.f32 %v2187_v13  ;;  %v2151_v35 = vadd.f32 %v2832_v26, %v1942_v40  ;;  %v2755_v5 = vadd.f32 %v2754_v43, %v2753_v14 }
 0x1f0   : > { %v3006_v19 = vpop.eup %3005  ;;  %3019 = vpow2.f32 %v2254_v7  ;;  %v2232_v42 = vmul.f32 %v4443_v45, %v2208_v48  ;;  %v2756_v44 = vpop.f32.mrf.mxu0 }
 0x1f1   : > { %v3008_v50 = vpop.eup %3007  ;;  %2277 = vst.msk [vmem:[%s4481_s16 + $0x20] sm:$0xff] %vm2272_vm0, %v3006_v19  ;;  %v2188_v1 = vmul.f32 %v4414_v39, %v2151_v35  ;;  %v1949_v32 = vadd.f32 %v2755_v5, %v1672_v6 }
 0x1f2   : > { %v2256_v49 = vmul.f32 1.442695, %v2232_v42  ;;  %v2210_v30 = vmul.f32 0.6931472, %v3008_v50  ;;  %v2757_v56 = vpop.f32.mrf.mxu0 }
 0x1f3   : > { %3021 = vlog2.f32 %v2188_v1  ;;  %v2158_v9 = vadd.f32 %v2835_v28, %v1949_v32  ;;  %v2758_v0 = vadd.f32 %v2757_v56, %v2756_v44 }
 0x1f4   : > { %v3010_v46 = vpop.eup %3009  ;;  %3023 = vpow2.f32 %v2256_v49  ;;  %v2233_v57 = vmul.f32 %v4443_v45, %v2210_v30 }
 0x1f5   : > { %v3012_v3 = vpop.eup %3011  ;;  %2278 = vst.msk [vmem:[%s4481_s16 + $0x28] sm:$0xff] %vm2272_vm0, %v3010_v46  ;;  %v2189_v2 = vmul.f32 %v4414_v39, %v2158_v9  ;;  %v1956_v58 = vadd.f32 %v2758_v0, %v1683_v31 }
 0x1f6   : > { %v2258_v61 = vmul.f32 1.442695, %v2233_v57  ;;  %v2212_v63 = vmul.f32 0.6931472, %v3012_v3 }
 0x1f7   : > { %3025 = vlog2.f32 %v2189_v2  ;;  %v2165_v16 = vadd.f32 %v2838_v11, %v1956_v58 }
 0x1f8   : > { %v3014_v17 = vpop.eup %3013  ;;  %3027 = vpow2.f32 %v2258_v61  ;;  %v2234_v53 = vmul.f32 %v4443_v45, %v2212_v63 }
 0x1f9   : > { %v3016_v22 = vpop.eup %3015  ;;  %v2214_v34 = vmul.f32 0.6931472, %v3014_v17  ;;  %v2190_v8 = vmul.f32 %v4414_v39, %v2165_v16 }
 0x1fa   : > { %2279 = vst.msk [vmem:[%s4481_s16 + $0x30] sm:$0xff] %vm2272_vm0, %v3016_v22  ;;  %v2260_v60 = vmul.f32 1.442695, %v2234_v53 }
 0x1fb   : > { %v2235_v47 = vmul.f32 %v4443_v45, %v2214_v34  ;;  %3029 = vlog2.f32 %v2190_v8 }
 0x1fc   : > { %v3018_v62 = vpop.eup %3017  ;;  %3031 = vpow2.f32 %v2260_v60 }
 0x1fd   : > { %v3020_v12 = vpop.eup %3019  ;;  %v2262_v18 = vmul.f32 1.442695, %v2235_v47  ;;  %v2216_v54 = vmul.f32 0.6931472, %v3018_v62 }
 0x1fe   : > { %2280 = vst.msk [vmem:[%s4481_s16 + $0x38] sm:$0xff] %vm2272_vm0, %v3020_v12 }
 0x1ff   : > { %3033 = vpow2.f32 %v2262_v18  ;;  %v2236_v25 = vmul.f32 %v4443_v45, %v2216_v54 }
 0x200   : > { %v3022_v33 = vpop.eup %3021 }
 0x201   : > { %v3024_v39 = vpop.eup %3023  ;;  %v2264_v24 = vmul.f32 1.442695, %v2236_v25  ;;  %v2218_v37 = vmul.f32 0.6931472, %v3022_v33 }
 0x202   : > { %2281 = vst.msk [vmem:[%s4481_s16 + $0x40] sm:$0xff] %vm2272_vm0, %v3024_v39 }
 0x203   : > { %3035 = vpow2.f32 %v2264_v24  ;;  %v2237_v51 = vmul.f32 %v4443_v45, %v2218_v37 }
 0x204   : > { %v3026_v38 = vpop.eup %3025 }
 0x205   : > { %v3028_v4 = vpop.eup %3027  ;;  %v2266_v10 = vmul.f32 1.442695, %v2237_v51  ;;  %v2220_v52 = vmul.f32 0.6931472, %v3026_v38 }
 0x206   : > { %2282 = vst.msk [vmem:[%s4481_s16 + $0x48] sm:$0xff] %vm2272_vm0, %v3028_v4 }
 0x207   : > { %3037 = vpow2.f32 %v2266_v10  ;;  %v2238_v41 = vmul.f32 %v4443_v45, %v2220_v52 }
 0x208   : > { %v3030_v59 = vpop.eup %3029 }
 0x209   : > { %v3032_v14 = vpop.eup %3031  ;;  %v2268_v55 = vmul.f32 1.442695, %v2238_v41  ;;  %v2222_v13 = vmul.f32 0.6931472, %v3030_v59 }
 0x20a   : > { %2283 = vst.msk [vmem:[%s4481_s16 + $0x50] sm:$0xff] %vm2272_vm0, %v3032_v14 }
 0x20b   : > { %3039 = vpow2.f32 %v2268_v55  ;;  %v2239_v40 = vmul.f32 %v4443_v45, %v2222_v13 }
 0x20c   : > { %v3034_v26 = vpop.eup %3033 }
 0x20d   : > { %2284 = vst.msk [vmem:[%s4481_s16 + $0x58] sm:$0xff] %vm2272_vm0, %v3034_v26  ;;  %v2270_v6 = vmul.f32 1.442695, %v2239_v40 }
 0x20f   : > { %3041 = vpow2.f32 %v2270_v6 }
 0x210   : > { %v3036_v7 = vpop.eup %3035 }
 0x211   : > { %2285 = vst.msk [vmem:[%s4481_s16 + $0x60] sm:$0xff] %vm2272_vm0, %v3036_v7 }
 0x214   : > { %v3038_v48 = vpop.eup %3037 }
 0x215   : > { %2286 = vst.msk [vmem:[%s4481_s16 + $0x68] sm:$0xff] %vm2272_vm0, %v3038_v48 }
 0x218   : > { %v3040_v43 = vpop.eup %3039 }
 0x219   : > { %2287 = vst.msk [vmem:[%s4481_s16 + $0x70] sm:$0xff] %vm2272_vm0, %v3040_v43 }
 0x21c   : > { %v3042_v15 = vpop.eup %3041 }
 0x21d   : > { %2288 = vst.msk [vmem:[%s4481_s16 + $0x78] sm:$0xff] %vm2272_vm0, %v3042_v15 }
 0x21e PF: > { %s15_s17 = sadd.s32 1, %s3049_s17  }
 0x21f   : > { %p12_p4 = scmp.ge.s32.totalorder %s15_s17, 4  }
 0x221   :  { %14 = sbr.rel (!%p12_p4) target bundleno = 2 (0x2), region = 66 }

</bundles_post_ra>
